<compile_context>
chip_gen: v5e
topology: v5e:2x2
jax: 0.10.0
libtpu: 0.0.40
codegen_flags: <defaults>
</compile_context>

<pallas_src>
import numpy as np
import jax
import jax.numpy as jnp
from jax import lax
from jax.experimental import pallas as pl
from jax.experimental.pallas import tpu as pltpu

LANE = 128
SUBLANE = 8


def _round_up(n, m):
    return (n + m - 1) // m * m


def _nade_kernel(x_ref, c_ref, w_ref, v_ref, b_ref, out_ref):
    D, TB = x_ref.shape                     # D variables, TB batch lanes
    H = c_ref.shape[0]                      # hidden size (sublanes of a/h)
    K = v_ref.shape[1]                      # padded max domain size (<= 8 here)

    x_i32 = x_ref[...]                      # (D, TB) int32
    x_f = x_i32.astype(jnp.float32)         # (D, TB) f32 (for the a-updates)

    a = jnp.broadcast_to(c_ref[...], (H, TB)).astype(jnp.float32)   # (H, TB)
    total = jnp.zeros((1, TB), jnp.float32)
    k_idx = lax.broadcasted_iota(jnp.int32, (K, 1), 0)               # sublane iota

    for i in range(D):                      # D small & static -> unrolled
        # sigmoid via tanh: one EUP pass, fully lane-dense (H, TB)
        h = 0.5 * jnp.tanh(0.5 * a) + 0.5
        # logits[k, b] = V_i[k, :] . h[:, b] + b_i[k]   -> (K, TB) lane-dense
        logits = jnp.dot(v_ref[i], h, preferred_element_type=jnp.float32)
        logits = logits + b_ref[i]                               # (K,1) bias, -1e30 pads
        # Categorical.log_prob(x_i) = logits[x_i] - logsumexp(logits)
        m = jnp.max(logits, axis=0, keepdims=True)               # (1, TB) sublane reduce
        s = jnp.sum(jnp.exp(logits - m), axis=0, keepdims=True)  # (1, TB)
        lse = jnp.log(s) + m                                     # (1, TB)
        sel = (k_idx == x_i32[i:i + 1, :])                       # (K, TB) one-hot
        picked = jnp.sum(jnp.where(sel, logits, 0.0), axis=0,
                         keepdims=True)                          # (1, TB)
        total = total + picked - lse
        if i < D - 1:
            # a += (x_i / dom_i) * w_i ; 1/dom_i is folded into w_ref column i
            a = a + x_f[i:i + 1, :] * w_ref[:, i:i + 1]          # (1,TB)*(H,1)

    out_ref[...] = total                                         # lane-dense (1, TB)


def pack_nade_params(c, W, V_list, b_list, domain_sizes):
    """Stack / pad per-variable parameters into kernel-friendly slabs."""
    D = len(V_list)
    H = int(np.asarray(c).shape[0])
    K = _round_up(max(SUBLANE, max(int(v.shape[0]) for v in V_list)), SUBLANE)

    V = np.zeros((D, K, H), np.float32)            # v[i].weight, zero-pad rows
    b = np.full((D, K, 1), -1e30, np.float32)      # v[i].bias, soft -inf pad
    for i in range(D):
        d = int(V_list[i].shape[0])
        V[i, :d, :] = np.asarray(V_list[i])
        b[i, :d, 0] = np.asarray(b_list[i])

    Wt = np.zeros((H, D), np.float32)              # w[i]/dom_i as column i
    for i in range(D - 1):
        Wt[:, i] = np.asarray(W[i]) / float(domain_sizes[i])

    c2 = np.asarray(c, np.float32).reshape(H, 1)
    return (jnp.asarray(c2), jnp.asarray(Wt), jnp.asarray(V), jnp.asarray(b))


def nade_log_prob(x, packed, *, tb=1024):
    """log_prob of the DiscreteNADE for integer samples x of shape (B, D)."""
    c2, Wt, V, b = packed
    B, D = x.shape
    H = c2.shape[0]
    K = V.shape[1]

    tb = max(LANE, (int(tb) // LANE) * LANE)       # lane-aligned tile request
    TB = _round_up(B, LANE)
    if TB > LANE:
        # guarantee >= 2 grid steps for large batches (v7x: 2 TCs share the
        # "parallel" grid axis); v5e/v6e are unaffected.
        TB = _round_up((B + 1) // 2, LANE)
    TB = min(TB, tb)
    B_pad = _round_up(B, TB)

    x_t = x.astype(jnp.int32).T                    # (D, B): batch on lanes
    if B_pad != B:
        x_t = jnp.pad(x_t, ((0, 0), (0, B_pad - B)))   # pad cols hit class 0 (valid)

    out = pl.pallas_call(
        _nade_kernel,
        grid=(B_pad // TB,),
        in_specs=[
            pl.BlockSpec((D, TB), lambda i: (0, i)),        # x^T      (batch-tiled)
            pl.BlockSpec((H, 1), lambda i: (0, 0)),         # c        (resident)
            pl.BlockSpec((H, D), lambda i: (0, 0)),         # W^T/dom  (resident)
            pl.BlockSpec((D, K, H), lambda i: (0, 0, 0)),   # V        (resident)
            pl.BlockSpec((D, K, 1), lambda i: (0, 0, 0)),   # biases   (resident)
        ],
        out_specs=pl.BlockSpec((1, TB), lambda i: (0, i)),  # lane-dense output row
        out_shape=jax.ShapeDtypeStruct((1, B_pad), jnp.float32),
        compiler_params=pltpu.CompilerParams(
            dimension_semantics=("parallel",)),
    )(x_t, c2, Wt, V, b)
    return out[0, :B]


def _reference_log_prob(x, c, W, V_list, b_list, domain_sizes):
    # pure-JAX mirror of DiscreteNADEDistribution.log_prob
    B = x.shape[0]
    D = len(V_list)
    dom = jnp.asarray(domain_sizes, jnp.float32)
    xnorm = x.astype(jnp.float32) / dom[None, :]
    a = jnp.broadcast_to(c[None, :], (B, c.shape[0]))
    total = jnp.zeros((B,), jnp.float32)
    for i in range(D):
        h = jax.nn.sigmoid(a)
        logits = h @ V_list[i].T + b_list[i]
        logp = jax.nn.log_softmax(logits, axis=1)
        total = total + logp[jnp.arange(B), x[:, i]]
        if i < D - 1:
            a = a + xnorm[:, i:i + 1] * W[i][None, :]
    return total


if __name__ == "__main__":
    # --- module hyper-parameters (small, consistent with the PyTorch module) ---
    data_size = 8                                     # D
    data_domain_sizes = [3, 5, 7, 4, 6, 3, 8, 5]      # per-variable domain sizes
    hidden_size = 32                                  # H

    key = jax.random.PRNGKey(0)
    keys = jax.random.split(key, 3 + 2 * data_size)

    # c : uniform(-1/sqrt(H), 1/sqrt(H))   (reset_parameters)
    stdv = 1.0 / np.sqrt(hidden_size)
    c = jax.random.uniform(keys[0], (hidden_size,), jnp.float32, -stdv, stdv)

    # w[i] : Linear(1, H, bias=False) weights
    W = jax.random.uniform(keys[1], (data_size - 1, hidden_size),
                           jnp.float32, -1.0, 1.0)

    # v[i] : Linear(H, dom_i, bias=True)
    V_list, b_list = [], []
    for i in range(data_size):
        d = data_domain_sizes[i]
        Vw = jax.random.uniform(keys[3 + 2 * i], (d, hidden_size),
                                jnp.float32, -stdv, stdv)
        Vb = jax.random.uniform(keys[4 + 2 * i], (d,), jnp.float32, -stdv, stdv)
        V_list.append(Vw)
        b_list.append(Vb)

    packed = pack_nade_params(c, W, V_list, b_list, data_domain_sizes)

    def make_x(k, batch):
        cols = []
        subkeys = jax.random.split(k, data_size)
        for i in range(data_size):
            cols.append(jax.random.randint(subkeys[i], (batch, 1), 0,
                                           data_domain_sizes[i], jnp.int32))
        return jnp.concatenate(cols, axis=1)

    # small batch (single grid step, lane padding) and a ragged batch
    # (2 tiled grid steps with batch padding) -- checked against the reference.
    for batch, tb in ((8, 1024), (300, 256)):
        x = make_x(jax.random.fold_in(key, batch), batch)
        out = jax.block_until_ready(nade_log_prob(x, packed, tb=tb))
        ref = _reference_log_prob(x, c, W, V_list, b_list, data_domain_sizes)
        np.testing.assert_allclose(np.asarray(out), np.asarray(ref),
                                   rtol=2e-5, atol=2e-5)

    print("KERNEL_OK")
</pallas_src>

<mosaic_0001>
module attributes {stable_mosaic.version = 11 : i64} {
  func.func @_nade_kernel(%arg0: i32, %arg1: memref<8x128xi32, #tpu.memory_space<vmem>>, %arg2: memref<32x1xf32, #tpu.memory_space<vmem>>, %arg3: memref<32x8xf32, #tpu.memory_space<vmem>>, %arg4: memref<8x8x32xf32, #tpu.memory_space<vmem>>, %arg5: memref<8x8x1xf32, #tpu.memory_space<vmem>>, %arg6: memref<1x128xf32, #tpu.memory_space<vmem>>) attributes {dimension_semantics = [#tpu.dimension_semantics<parallel>], iteration_bounds = array<i64: 1>, scalar_prefetch = 0 : i64, scratch_operands = 0 : i64, tpu.core_type = #tpu.core_type<tc>, window_params = [{transform_indices = @transform_0, window_bounds = array<i64: 8, 128>}, {pipeline_mode = #tpu.pipeline_mode<synchronous>, transform_indices = @transform_1, window_bounds = array<i64: 32, 1>}, {pipeline_mode = #tpu.pipeline_mode<synchronous>, transform_indices = @transform_2, window_bounds = array<i64: 32, 8>}, {pipeline_mode = #tpu.pipeline_mode<synchronous>, transform_indices = @transform_3, window_bounds = array<i64: 8, 8, 32>}, {pipeline_mode = #tpu.pipeline_mode<synchronous>, transform_indices = @transform_4, window_bounds = array<i64: 8, 8, 1>}, {transform_indices = @transform_5, window_bounds = array<i64: 1, 128>}]} {
    %c0 = arith.constant 0 : index
    %c0_0 = arith.constant 0 : index
    %0 = vector.load %arg1[%c0, %c0_0] : memref<8x128xi32, #tpu.memory_space<vmem>>, vector<8x128xi32>
    %1 = arith.sitofp %0 : vector<8x128xi32> to vector<8x128xf32>
    %c0_1 = arith.constant 0 : index
    %c0_2 = arith.constant 0 : index
    %2 = vector.load %arg2[%c0_1, %c0_2] : memref<32x1xf32, #tpu.memory_space<vmem>>, vector<32x1xf32>
    %3 = vector.shape_cast %2 : vector<32x1xf32> to vector<32x1xf32>
    %4 = vector.broadcast %3 : vector<32x1xf32> to vector<32x128xf32>
    %cst = arith.constant 0.000000e+00 : f32
    %5 = vector.broadcast %cst : f32 to vector<1x128xf32>
    %6 = tpu.iota {dimensions = array<i32: 0>} : vector<8x1xi32>
    %cst_3 = arith.constant 5.000000e-01 : f32
    %7 = vector.broadcast %cst_3 : f32 to vector<32x128xf32>
    %8 = arith.mulf %7, %4 : vector<32x128xf32>
    %9 = math.tanh %8 : vector<32x128xf32>
    %cst_4 = arith.constant 5.000000e-01 : f32
    %10 = vector.broadcast %cst_4 : f32 to vector<32x128xf32>
    %11 = arith.mulf %10, %9 : vector<32x128xf32>
    %cst_5 = arith.constant 5.000000e-01 : f32
    %12 = vector.broadcast %cst_5 : f32 to vector<32x128xf32>
    %13 = arith.addf %11, %12 : vector<32x128xf32>
    %c0_6 = arith.constant 0 : index
    %c0_7 = arith.constant 0 : index
    %c0_8 = arith.constant 0 : index
    %14 = vector.load %arg4[%c0_6, %c0_7, %c0_8] : memref<8x8x32xf32, #tpu.memory_space<vmem>>, vector<1x8x32xf32>
    %15 = vector.shape_cast %14 : vector<1x8x32xf32> to vector<8x32xf32>
    %cst_9 = arith.constant dense<0.000000e+00> : vector<8x128xf32>
    %16 = tpu.matmul %15, %13, %cst_9 {dimension_numbers = #tpu.dot_dimension_numbers<[1], [0], [0], [1], [0, 0, 1, 1], [], []>} : vector<8x32xf32>, vector<32x128xf32>, vector<8x128xf32> -> vector<8x128xf32>
    %c0_10 = arith.constant 0 : index
    %c0_11 = arith.constant 0 : index
    %c0_12 = arith.constant 0 : index
    %17 = vector.load %arg5[%c0_10, %c0_11, %c0_12] : memref<8x8x1xf32, #tpu.memory_space<vmem>>, vector<1x8x1xf32>
    %18 = vector.shape_cast %17 : vector<1x8x1xf32> to vector<8x1xf32>
    %19 = vector.broadcast %18 : vector<8x1xf32> to vector<8x128xf32>
    %20 = arith.addf %16, %19 : vector<8x128xf32>
    %cst_13 = arith.constant dense<0xFF800000> : vector<128xf32>
    %21 = vector.multi_reduction <maximumf>, %20, %cst_13 [0] : vector<8x128xf32> to vector<128xf32>
    %22 = vector.shape_cast %21 : vector<128xf32> to vector<1x128xf32>
    %23 = vector.broadcast %22 : vector<1x128xf32> to vector<8x128xf32>
    %24 = arith.subf %20, %23 : vector<8x128xf32>
    %25 = math.exp %24 : vector<8x128xf32>
    %cst_14 = arith.constant dense<0.000000e+00> : vector<128xf32>
    %26 = vector.multi_reduction <add>, %25, %cst_14 [0] : vector<8x128xf32> to vector<128xf32>
    %27 = vector.shape_cast %26 : vector<128xf32> to vector<1x128xf32>
    %28 = math.log %27 : vector<1x128xf32>
    %29 = arith.addf %28, %22 : vector<1x128xf32>
    %30 = vector.extract_strided_slice %0 {offsets = [0, 0], sizes = [1, 128], strides = [1, 1]} : vector<8x128xi32> to vector<1x128xi32>
    %31 = vector.broadcast %6 : vector<8x1xi32> to vector<8x128xi32>
    %32 = vector.broadcast %30 : vector<1x128xi32> to vector<8x128xi32>
    %33 = arith.cmpi eq, %31, %32 : vector<8x128xi32>
    %cst_15 = arith.constant 0.000000e+00 : f32
    %34 = vector.broadcast %cst_15 : f32 to vector<8x128xf32>
    %35 = arith.select %33, %20, %34 : vector<8x128xi1>, vector<8x128xf32>
    %cst_16 = arith.constant dense<0.000000e+00> : vector<128xf32>
    %36 = vector.multi_reduction <add>, %35, %cst_16 [0] : vector<8x128xf32> to vector<128xf32>
    %37 = vector.shape_cast %36 : vector<128xf32> to vector<1x128xf32>
    %38 = arith.addf %5, %37 : vector<1x128xf32>
    %39 = arith.subf %38, %29 : vector<1x128xf32>
    %40 = vector.extract_strided_slice %1 {offsets = [0, 0], sizes = [1, 128], strides = [1, 1]} : vector<8x128xf32> to vector<1x128xf32>
    %c0_17 = arith.constant 0 : index
    %c0_18 = arith.constant 0 : index
    %41 = vector.load %arg3[%c0_17, %c0_18] : memref<32x8xf32, #tpu.memory_space<vmem>>, vector<32x1xf32>
    %42 = vector.broadcast %40 : vector<1x128xf32> to vector<32x128xf32>
    %43 = vector.broadcast %41 : vector<32x1xf32> to vector<32x128xf32>
    %44 = arith.mulf %42, %43 : vector<32x128xf32>
    %45 = arith.addf %4, %44 : vector<32x128xf32>
    %cst_19 = arith.constant 5.000000e-01 : f32
    %46 = vector.broadcast %cst_19 : f32 to vector<32x128xf32>
    %47 = arith.mulf %46, %45 : vector<32x128xf32>
    %48 = math.tanh %47 : vector<32x128xf32>
    %cst_20 = arith.constant 5.000000e-01 : f32
    %49 = vector.broadcast %cst_20 : f32 to vector<32x128xf32>
    %50 = arith.mulf %49, %48 : vector<32x128xf32>
    %cst_21 = arith.constant 5.000000e-01 : f32
    %51 = vector.broadcast %cst_21 : f32 to vector<32x128xf32>
    %52 = arith.addf %50, %51 : vector<32x128xf32>
    %c1 = arith.constant 1 : index
    %c0_22 = arith.constant 0 : index
    %c0_23 = arith.constant 0 : index
    %53 = vector.load %arg4[%c1, %c0_22, %c0_23] : memref<8x8x32xf32, #tpu.memory_space<vmem>>, vector<1x8x32xf32>
    %54 = vector.shape_cast %53 : vector<1x8x32xf32> to vector<8x32xf32>
    %cst_24 = arith.constant dense<0.000000e+00> : vector<8x128xf32>
    %55 = tpu.matmul %54, %52, %cst_24 {dimension_numbers = #tpu.dot_dimension_numbers<[1], [0], [0], [1], [0, 0, 1, 1], [], []>} : vector<8x32xf32>, vector<32x128xf32>, vector<8x128xf32> -> vector<8x128xf32>
    %c1_25 = arith.constant 1 : index
    %c0_26 = arith.constant 0 : index
    %c0_27 = arith.constant 0 : index
    %56 = vector.load %arg5[%c1_25, %c0_26, %c0_27] : memref<8x8x1xf32, #tpu.memory_space<vmem>>, vector<1x8x1xf32>
    %57 = vector.shape_cast %56 : vector<1x8x1xf32> to vector<8x1xf32>
    %58 = vector.broadcast %57 : vector<8x1xf32> to vector<8x128xf32>
    %59 = arith.addf %55, %58 : vector<8x128xf32>
    %cst_28 = arith.constant dense<0xFF800000> : vector<128xf32>
    %60 = vector.multi_reduction <maximumf>, %59, %cst_28 [0] : vector<8x128xf32> to vector<128xf32>
    %61 = vector.shape_cast %60 : vector<128xf32> to vector<1x128xf32>
    %62 = vector.broadcast %61 : vector<1x128xf32> to vector<8x128xf32>
    %63 = arith.subf %59, %62 : vector<8x128xf32>
    %64 = math.exp %63 : vector<8x128xf32>
    %cst_29 = arith.constant dense<0.000000e+00> : vector<128xf32>
    %65 = vector.multi_reduction <add>, %64, %cst_29 [0] : vector<8x128xf32> to vector<128xf32>
    %66 = vector.shape_cast %65 : vector<128xf32> to vector<1x128xf32>
    %67 = math.log %66 : vector<1x128xf32>
    %68 = arith.addf %67, %61 : vector<1x128xf32>
    %69 = vector.extract_strided_slice %0 {offsets = [1, 0], sizes = [1, 128], strides = [1, 1]} : vector<8x128xi32> to vector<1x128xi32>
    %70 = vector.broadcast %6 : vector<8x1xi32> to vector<8x128xi32>
    %71 = vector.broadcast %69 : vector<1x128xi32> to vector<8x128xi32>
    %72 = arith.cmpi eq, %70, %71 : vector<8x128xi32>
    %cst_30 = arith.constant 0.000000e+00 : f32
    %73 = vector.broadcast %cst_30 : f32 to vector<8x128xf32>
    %74 = arith.select %72, %59, %73 : vector<8x128xi1>, vector<8x128xf32>
    %cst_31 = arith.constant dense<0.000000e+00> : vector<128xf32>
    %75 = vector.multi_reduction <add>, %74, %cst_31 [0] : vector<8x128xf32> to vector<128xf32>
    %76 = vector.shape_cast %75 : vector<128xf32> to vector<1x128xf32>
    %77 = arith.addf %39, %76 : vector<1x128xf32>
    %78 = arith.subf %77, %68 : vector<1x128xf32>
    %79 = vector.extract_strided_slice %1 {offsets = [1, 0], sizes = [1, 128], strides = [1, 1]} : vector<8x128xf32> to vector<1x128xf32>
    %c0_32 = arith.constant 0 : index
    %c1_33 = arith.constant 1 : index
    %80 = vector.load %arg3[%c0_32, %c1_33] : memref<32x8xf32, #tpu.memory_space<vmem>>, vector<32x1xf32>
    %81 = vector.broadcast %79 : vector<1x128xf32> to vector<32x128xf32>
    %82 = vector.broadcast %80 : vector<32x1xf32> to vector<32x128xf32>
    %83 = arith.mulf %81, %82 : vector<32x128xf32>
    %84 = arith.addf %45, %83 : vector<32x128xf32>
    %cst_34 = arith.constant 5.000000e-01 : f32
    %85 = vector.broadcast %cst_34 : f32 to vector<32x128xf32>
    %86 = arith.mulf %85, %84 : vector<32x128xf32>
    %87 = math.tanh %86 : vector<32x128xf32>
    %cst_35 = arith.constant 5.000000e-01 : f32
    %88 = vector.broadcast %cst_35 : f32 to vector<32x128xf32>
    %89 = arith.mulf %88, %87 : vector<32x128xf32>
    %cst_36 = arith.constant 5.000000e-01 : f32
    %90 = vector.broadcast %cst_36 : f32 to vector<32x128xf32>
    %91 = arith.addf %89, %90 : vector<32x128xf32>
    %c2 = arith.constant 2 : index
    %c0_37 = arith.constant 0 : index
    %c0_38 = arith.constant 0 : index
    %92 = vector.load %arg4[%c2, %c0_37, %c0_38] : memref<8x8x32xf32, #tpu.memory_space<vmem>>, vector<1x8x32xf32>
    %93 = vector.shape_cast %92 : vector<1x8x32xf32> to vector<8x32xf32>
    %cst_39 = arith.constant dense<0.000000e+00> : vector<8x128xf32>
    %94 = tpu.matmul %93, %91, %cst_39 {dimension_numbers = #tpu.dot_dimension_numbers<[1], [0], [0], [1], [0, 0, 1, 1], [], []>} : vector<8x32xf32>, vector<32x128xf32>, vector<8x128xf32> -> vector<8x128xf32>
    %c2_40 = arith.constant 2 : index
    %c0_41 = arith.constant 0 : index
    %c0_42 = arith.constant 0 : index
    %95 = vector.load %arg5[%c2_40, %c0_41, %c0_42] : memref<8x8x1xf32, #tpu.memory_space<vmem>>, vector<1x8x1xf32>
    %96 = vector.shape_cast %95 : vector<1x8x1xf32> to vector<8x1xf32>
    %97 = vector.broadcast %96 : vector<8x1xf32> to vector<8x128xf32>
    %98 = arith.addf %94, %97 : vector<8x128xf32>
    %cst_43 = arith.constant dense<0xFF800000> : vector<128xf32>
    %99 = vector.multi_reduction <maximumf>, %98, %cst_43 [0] : vector<8x128xf32> to vector<128xf32>
    %100 = vector.shape_cast %99 : vector<128xf32> to vector<1x128xf32>
    %101 = vector.broadcast %100 : vector<1x128xf32> to vector<8x128xf32>
    %102 = arith.subf %98, %101 : vector<8x128xf32>
    %103 = math.exp %102 : vector<8x128xf32>
    %cst_44 = arith.constant dense<0.000000e+00> : vector<128xf32>
    %104 = vector.multi_reduction <add>, %103, %cst_44 [0] : vector<8x128xf32> to vector<128xf32>
    %105 = vector.shape_cast %104 : vector<128xf32> to vector<1x128xf32>
    %106 = math.log %105 : vector<1x128xf32>
    %107 = arith.addf %106, %100 : vector<1x128xf32>
    %108 = vector.extract_strided_slice %0 {offsets = [2, 0], sizes = [1, 128], strides = [1, 1]} : vector<8x128xi32> to vector<1x128xi32>
    %109 = vector.broadcast %6 : vector<8x1xi32> to vector<8x128xi32>
    %110 = vector.broadcast %108 : vector<1x128xi32> to vector<8x128xi32>
    %111 = arith.cmpi eq, %109, %110 : vector<8x128xi32>
    %cst_45 = arith.constant 0.000000e+00 : f32
    %112 = vector.broadcast %cst_45 : f32 to vector<8x128xf32>
    %113 = arith.select %111, %98, %112 : vector<8x128xi1>, vector<8x128xf32>
    %cst_46 = arith.constant dense<0.000000e+00> : vector<128xf32>
    %114 = vector.multi_reduction <add>, %113, %cst_46 [0] : vector<8x128xf32> to vector<128xf32>
    %115 = vector.shape_cast %114 : vector<128xf32> to vector<1x128xf32>
    %116 = arith.addf %78, %115 : vector<1x128xf32>
    %117 = arith.subf %116, %107 : vector<1x128xf32>
    %118 = vector.extract_strided_slice %1 {offsets = [2, 0], sizes = [1, 128], strides = [1, 1]} : vector<8x128xf32> to vector<1x128xf32>
    %c0_47 = arith.constant 0 : index
    %c2_48 = arith.constant 2 : index
    %119 = vector.load %arg3[%c0_47, %c2_48] : memref<32x8xf32, #tpu.memory_space<vmem>>, vector<32x1xf32>
    %120 = vector.broadcast %118 : vector<1x128xf32> to vector<32x128xf32>
    %121 = vector.broadcast %119 : vector<32x1xf32> to vector<32x128xf32>
    %122 = arith.mulf %120, %121 : vector<32x128xf32>
    %123 = arith.addf %84, %122 : vector<32x128xf32>
    %cst_49 = arith.constant 5.000000e-01 : f32
    %124 = vector.broadcast %cst_49 : f32 to vector<32x128xf32>
    %125 = arith.mulf %124, %123 : vector<32x128xf32>
    %126 = math.tanh %125 : vector<32x128xf32>
    %cst_50 = arith.constant 5.000000e-01 : f32
    %127 = vector.broadcast %cst_50 : f32 to vector<32x128xf32>
    %128 = arith.mulf %127, %126 : vector<32x128xf32>
    %cst_51 = arith.constant 5.000000e-01 : f32
    %129 = vector.broadcast %cst_51 : f32 to vector<32x128xf32>
    %130 = arith.addf %128, %129 : vector<32x128xf32>
    %c3 = arith.constant 3 : index
    %c0_52 = arith.constant 0 : index
    %c0_53 = arith.constant 0 : index
    %131 = vector.load %arg4[%c3, %c0_52, %c0_53] : memref<8x8x32xf32, #tpu.memory_space<vmem>>, vector<1x8x32xf32>
    %132 = vector.shape_cast %131 : vector<1x8x32xf32> to vector<8x32xf32>
    %cst_54 = arith.constant dense<0.000000e+00> : vector<8x128xf32>
    %133 = tpu.matmul %132, %130, %cst_54 {dimension_numbers = #tpu.dot_dimension_numbers<[1], [0], [0], [1], [0, 0, 1, 1], [], []>} : vector<8x32xf32>, vector<32x128xf32>, vector<8x128xf32> -> vector<8x128xf32>
    %c3_55 = arith.constant 3 : index
    %c0_56 = arith.constant 0 : index
    %c0_57 = arith.constant 0 : index
    %134 = vector.load %arg5[%c3_55, %c0_56, %c0_57] : memref<8x8x1xf32, #tpu.memory_space<vmem>>, vector<1x8x1xf32>
    %135 = vector.shape_cast %134 : vector<1x8x1xf32> to vector<8x1xf32>
    %136 = vector.broadcast %135 : vector<8x1xf32> to vector<8x128xf32>
    %137 = arith.addf %133, %136 : vector<8x128xf32>
    %cst_58 = arith.constant dense<0xFF800000> : vector<128xf32>
    %138 = vector.multi_reduction <maximumf>, %137, %cst_58 [0] : vector<8x128xf32> to vector<128xf32>
    %139 = vector.shape_cast %138 : vector<128xf32> to vector<1x128xf32>
    %140 = vector.broadcast %139 : vector<1x128xf32> to vector<8x128xf32>
    %141 = arith.subf %137, %140 : vector<8x128xf32>
    %142 = math.exp %141 : vector<8x128xf32>
    %cst_59 = arith.constant dense<0.000000e+00> : vector<128xf32>
    %143 = vector.multi_reduction <add>, %142, %cst_59 [0] : vector<8x128xf32> to vector<128xf32>
    %144 = vector.shape_cast %143 : vector<128xf32> to vector<1x128xf32>
    %145 = math.log %144 : vector<1x128xf32>
    %146 = arith.addf %145, %139 : vector<1x128xf32>
    %147 = vector.extract_strided_slice %0 {offsets = [3, 0], sizes = [1, 128], strides = [1, 1]} : vector<8x128xi32> to vector<1x128xi32>
    %148 = vector.broadcast %6 : vector<8x1xi32> to vector<8x128xi32>
    %149 = vector.broadcast %147 : vector<1x128xi32> to vector<8x128xi32>
    %150 = arith.cmpi eq, %148, %149 : vector<8x128xi32>
    %cst_60 = arith.constant 0.000000e+00 : f32
    %151 = vector.broadcast %cst_60 : f32 to vector<8x128xf32>
    %152 = arith.select %150, %137, %151 : vector<8x128xi1>, vector<8x128xf32>
    %cst_61 = arith.constant dense<0.000000e+00> : vector<128xf32>
    %153 = vector.multi_reduction <add>, %152, %cst_61 [0] : vector<8x128xf32> to vector<128xf32>
    %154 = vector.shape_cast %153 : vector<128xf32> to vector<1x128xf32>
    %155 = arith.addf %117, %154 : vector<1x128xf32>
    %156 = arith.subf %155, %146 : vector<1x128xf32>
    %157 = vector.extract_strided_slice %1 {offsets = [3, 0], sizes = [1, 128], strides = [1, 1]} : vector<8x128xf32> to vector<1x128xf32>
    %c0_62 = arith.constant 0 : index
    %c3_63 = arith.constant 3 : index
    %158 = vector.load %arg3[%c0_62, %c3_63] : memref<32x8xf32, #tpu.memory_space<vmem>>, vector<32x1xf32>
    %159 = vector.broadcast %157 : vector<1x128xf32> to vector<32x128xf32>
    %160 = vector.broadcast %158 : vector<32x1xf32> to vector<32x128xf32>
    %161 = arith.mulf %159, %160 : vector<32x128xf32>
    %162 = arith.addf %123, %161 : vector<32x128xf32>
    %cst_64 = arith.constant 5.000000e-01 : f32
    %163 = vector.broadcast %cst_64 : f32 to vector<32x128xf32>
    %164 = arith.mulf %163, %162 : vector<32x128xf32>
    %165 = math.tanh %164 : vector<32x128xf32>
    %cst_65 = arith.constant 5.000000e-01 : f32
    %166 = vector.broadcast %cst_65 : f32 to vector<32x128xf32>
    %167 = arith.mulf %166, %165 : vector<32x128xf32>
    %cst_66 = arith.constant 5.000000e-01 : f32
    %168 = vector.broadcast %cst_66 : f32 to vector<32x128xf32>
    %169 = arith.addf %167, %168 : vector<32x128xf32>
    %c4 = arith.constant 4 : index
    %c0_67 = arith.constant 0 : index
    %c0_68 = arith.constant 0 : index
    %170 = vector.load %arg4[%c4, %c0_67, %c0_68] : memref<8x8x32xf32, #tpu.memory_space<vmem>>, vector<1x8x32xf32>
    %171 = vector.shape_cast %170 : vector<1x8x32xf32> to vector<8x32xf32>
    %cst_69 = arith.constant dense<0.000000e+00> : vector<8x128xf32>
    %172 = tpu.matmul %171, %169, %cst_69 {dimension_numbers = #tpu.dot_dimension_numbers<[1], [0], [0], [1], [0, 0, 1, 1], [], []>} : vector<8x32xf32>, vector<32x128xf32>, vector<8x128xf32> -> vector<8x128xf32>
    %c4_70 = arith.constant 4 : index
    %c0_71 = arith.constant 0 : index
    %c0_72 = arith.constant 0 : index
    %173 = vector.load %arg5[%c4_70, %c0_71, %c0_72] : memref<8x8x1xf32, #tpu.memory_space<vmem>>, vector<1x8x1xf32>
    %174 = vector.shape_cast %173 : vector<1x8x1xf32> to vector<8x1xf32>
    %175 = vector.broadcast %174 : vector<8x1xf32> to vector<8x128xf32>
    %176 = arith.addf %172, %175 : vector<8x128xf32>
    %cst_73 = arith.constant dense<0xFF800000> : vector<128xf32>
    %177 = vector.multi_reduction <maximumf>, %176, %cst_73 [0] : vector<8x128xf32> to vector<128xf32>
    %178 = vector.shape_cast %177 : vector<128xf32> to vector<1x128xf32>
    %179 = vector.broadcast %178 : vector<1x128xf32> to vector<8x128xf32>
    %180 = arith.subf %176, %179 : vector<8x128xf32>
    %181 = math.exp %180 : vector<8x128xf32>
    %cst_74 = arith.constant dense<0.000000e+00> : vector<128xf32>
    %182 = vector.multi_reduction <add>, %181, %cst_74 [0] : vector<8x128xf32> to vector<128xf32>
    %183 = vector.shape_cast %182 : vector<128xf32> to vector<1x128xf32>
    %184 = math.log %183 : vector<1x128xf32>
    %185 = arith.addf %184, %178 : vector<1x128xf32>
    %186 = vector.extract_strided_slice %0 {offsets = [4, 0], sizes = [1, 128], strides = [1, 1]} : vector<8x128xi32> to vector<1x128xi32>
    %187 = vector.broadcast %6 : vector<8x1xi32> to vector<8x128xi32>
    %188 = vector.broadcast %186 : vector<1x128xi32> to vector<8x128xi32>
    %189 = arith.cmpi eq, %187, %188 : vector<8x128xi32>
    %cst_75 = arith.constant 0.000000e+00 : f32
    %190 = vector.broadcast %cst_75 : f32 to vector<8x128xf32>
    %191 = arith.select %189, %176, %190 : vector<8x128xi1>, vector<8x128xf32>
    %cst_76 = arith.constant dense<0.000000e+00> : vector<128xf32>
    %192 = vector.multi_reduction <add>, %191, %cst_76 [0] : vector<8x128xf32> to vector<128xf32>
    %193 = vector.shape_cast %192 : vector<128xf32> to vector<1x128xf32>
    %194 = arith.addf %156, %193 : vector<1x128xf32>
    %195 = arith.subf %194, %185 : vector<1x128xf32>
    %196 = vector.extract_strided_slice %1 {offsets = [4, 0], sizes = [1, 128], strides = [1, 1]} : vector<8x128xf32> to vector<1x128xf32>
    %c0_77 = arith.constant 0 : index
    %c4_78 = arith.constant 4 : index
    %197 = vector.load %arg3[%c0_77, %c4_78] : memref<32x8xf32, #tpu.memory_space<vmem>>, vector<32x1xf32>
    %198 = vector.broadcast %196 : vector<1x128xf32> to vector<32x128xf32>
    %199 = vector.broadcast %197 : vector<32x1xf32> to vector<32x128xf32>
    %200 = arith.mulf %198, %199 : vector<32x128xf32>
    %201 = arith.addf %162, %200 : vector<32x128xf32>
    %cst_79 = arith.constant 5.000000e-01 : f32
    %202 = vector.broadcast %cst_79 : f32 to vector<32x128xf32>
    %203 = arith.mulf %202, %201 : vector<32x128xf32>
    %204 = math.tanh %203 : vector<32x128xf32>
    %cst_80 = arith.constant 5.000000e-01 : f32
    %205 = vector.broadcast %cst_80 : f32 to vector<32x128xf32>
    %206 = arith.mulf %205, %204 : vector<32x128xf32>
    %cst_81 = arith.constant 5.000000e-01 : f32
    %207 = vector.broadcast %cst_81 : f32 to vector<32x128xf32>
    %208 = arith.addf %206, %207 : vector<32x128xf32>
    %c5 = arith.constant 5 : index
    %c0_82 = arith.constant 0 : index
    %c0_83 = arith.constant 0 : index
    %209 = vector.load %arg4[%c5, %c0_82, %c0_83] : memref<8x8x32xf32, #tpu.memory_space<vmem>>, vector<1x8x32xf32>
    %210 = vector.shape_cast %209 : vector<1x8x32xf32> to vector<8x32xf32>
    %cst_84 = arith.constant dense<0.000000e+00> : vector<8x128xf32>
    %211 = tpu.matmul %210, %208, %cst_84 {dimension_numbers = #tpu.dot_dimension_numbers<[1], [0], [0], [1], [0, 0, 1, 1], [], []>} : vector<8x32xf32>, vector<32x128xf32>, vector<8x128xf32> -> vector<8x128xf32>
    %c5_85 = arith.constant 5 : index
    %c0_86 = arith.constant 0 : index
    %c0_87 = arith.constant 0 : index
    %212 = vector.load %arg5[%c5_85, %c0_86, %c0_87] : memref<8x8x1xf32, #tpu.memory_space<vmem>>, vector<1x8x1xf32>
    %213 = vector.shape_cast %212 : vector<1x8x1xf32> to vector<8x1xf32>
    %214 = vector.broadcast %213 : vector<8x1xf32> to vector<8x128xf32>
    %215 = arith.addf %211, %214 : vector<8x128xf32>
    %cst_88 = arith.constant dense<0xFF800000> : vector<128xf32>
    %216 = vector.multi_reduction <maximumf>, %215, %cst_88 [0] : vector<8x128xf32> to vector<128xf32>
    %217 = vector.shape_cast %216 : vector<128xf32> to vector<1x128xf32>
    %218 = vector.broadcast %217 : vector<1x128xf32> to vector<8x128xf32>
    %219 = arith.subf %215, %218 : vector<8x128xf32>
    %220 = math.exp %219 : vector<8x128xf32>
    %cst_89 = arith.constant dense<0.000000e+00> : vector<128xf32>
    %221 = vector.multi_reduction <add>, %220, %cst_89 [0] : vector<8x128xf32> to vector<128xf32>
    %222 = vector.shape_cast %221 : vector<128xf32> to vector<1x128xf32>
    %223 = math.log %222 : vector<1x128xf32>
    %224 = arith.addf %223, %217 : vector<1x128xf32>
    %225 = vector.extract_strided_slice %0 {offsets = [5, 0], sizes = [1, 128], strides = [1, 1]} : vector<8x128xi32> to vector<1x128xi32>
    %226 = vector.broadcast %6 : vector<8x1xi32> to vector<8x128xi32>
    %227 = vector.broadcast %225 : vector<1x128xi32> to vector<8x128xi32>
    %228 = arith.cmpi eq, %226, %227 : vector<8x128xi32>
    %cst_90 = arith.constant 0.000000e+00 : f32
    %229 = vector.broadcast %cst_90 : f32 to vector<8x128xf32>
    %230 = arith.select %228, %215, %229 : vector<8x128xi1>, vector<8x128xf32>
    %cst_91 = arith.constant dense<0.000000e+00> : vector<128xf32>
    %231 = vector.multi_reduction <add>, %230, %cst_91 [0] : vector<8x128xf32> to vector<128xf32>
    %232 = vector.shape_cast %231 : vector<128xf32> to vector<1x128xf32>
    %233 = arith.addf %195, %232 : vector<1x128xf32>
    %234 = arith.subf %233, %224 : vector<1x128xf32>
    %235 = vector.extract_strided_slice %1 {offsets = [5, 0], sizes = [1, 128], strides = [1, 1]} : vector<8x128xf32> to vector<1x128xf32>
    %c0_92 = arith.constant 0 : index
    %c5_93 = arith.constant 5 : index
    %236 = vector.load %arg3[%c0_92, %c5_93] : memref<32x8xf32, #tpu.memory_space<vmem>>, vector<32x1xf32>
    %237 = vector.broadcast %235 : vector<1x128xf32> to vector<32x128xf32>
    %238 = vector.broadcast %236 : vector<32x1xf32> to vector<32x128xf32>
    %239 = arith.mulf %237, %238 : vector<32x128xf32>
    %240 = arith.addf %201, %239 : vector<32x128xf32>
    %cst_94 = arith.constant 5.000000e-01 : f32
    %241 = vector.broadcast %cst_94 : f32 to vector<32x128xf32>
    %242 = arith.mulf %241, %240 : vector<32x128xf32>
    %243 = math.tanh %242 : vector<32x128xf32>
    %cst_95 = arith.constant 5.000000e-01 : f32
    %244 = vector.broadcast %cst_95 : f32 to vector<32x128xf32>
    %245 = arith.mulf %244, %243 : vector<32x128xf32>
    %cst_96 = arith.constant 5.000000e-01 : f32
    %246 = vector.broadcast %cst_96 : f32 to vector<32x128xf32>
    %247 = arith.addf %245, %246 : vector<32x128xf32>
    %c6 = arith.constant 6 : index
    %c0_97 = arith.constant 0 : index
    %c0_98 = arith.constant 0 : index
    %248 = vector.load %arg4[%c6, %c0_97, %c0_98] : memref<8x8x32xf32, #tpu.memory_space<vmem>>, vector<1x8x32xf32>
    %249 = vector.shape_cast %248 : vector<1x8x32xf32> to vector<8x32xf32>
    %cst_99 = arith.constant dense<0.000000e+00> : vector<8x128xf32>
    %250 = tpu.matmul %249, %247, %cst_99 {dimension_numbers = #tpu.dot_dimension_numbers<[1], [0], [0], [1], [0, 0, 1, 1], [], []>} : vector<8x32xf32>, vector<32x128xf32>, vector<8x128xf32> -> vector<8x128xf32>
    %c6_100 = arith.constant 6 : index
    %c0_101 = arith.constant 0 : index
    %c0_102 = arith.constant 0 : index
    %251 = vector.load %arg5[%c6_100, %c0_101, %c0_102] : memref<8x8x1xf32, #tpu.memory_space<vmem>>, vector<1x8x1xf32>
    %252 = vector.shape_cast %251 : vector<1x8x1xf32> to vector<8x1xf32>
    %253 = vector.broadcast %252 : vector<8x1xf32> to vector<8x128xf32>
    %254 = arith.addf %250, %253 : vector<8x128xf32>
    %cst_103 = arith.constant dense<0xFF800000> : vector<128xf32>
    %255 = vector.multi_reduction <maximumf>, %254, %cst_103 [0] : vector<8x128xf32> to vector<128xf32>
    %256 = vector.shape_cast %255 : vector<128xf32> to vector<1x128xf32>
    %257 = vector.broadcast %256 : vector<1x128xf32> to vector<8x128xf32>
    %258 = arith.subf %254, %257 : vector<8x128xf32>
    %259 = math.exp %258 : vector<8x128xf32>
    %cst_104 = arith.constant dense<0.000000e+00> : vector<128xf32>
    %260 = vector.multi_reduction <add>, %259, %cst_104 [0] : vector<8x128xf32> to vector<128xf32>
    %261 = vector.shape_cast %260 : vector<128xf32> to vector<1x128xf32>
    %262 = math.log %261 : vector<1x128xf32>
    %263 = arith.addf %262, %256 : vector<1x128xf32>
    %264 = vector.extract_strided_slice %0 {offsets = [6, 0], sizes = [1, 128], strides = [1, 1]} : vector<8x128xi32> to vector<1x128xi32>
    %265 = vector.broadcast %6 : vector<8x1xi32> to vector<8x128xi32>
    %266 = vector.broadcast %264 : vector<1x128xi32> to vector<8x128xi32>
    %267 = arith.cmpi eq, %265, %266 : vector<8x128xi32>
    %cst_105 = arith.constant 0.000000e+00 : f32
    %268 = vector.broadcast %cst_105 : f32 to vector<8x128xf32>
    %269 = arith.select %267, %254, %268 : vector<8x128xi1>, vector<8x128xf32>
    %cst_106 = arith.constant dense<0.000000e+00> : vector<128xf32>
    %270 = vector.multi_reduction <add>, %269, %cst_106 [0] : vector<8x128xf32> to vector<128xf32>
    %271 = vector.shape_cast %270 : vector<128xf32> to vector<1x128xf32>
    %272 = arith.addf %234, %271 : vector<1x128xf32>
    %273 = arith.subf %272, %263 : vector<1x128xf32>
    %274 = vector.extract_strided_slice %1 {offsets = [6, 0], sizes = [1, 128], strides = [1, 1]} : vector<8x128xf32> to vector<1x128xf32>
    %c0_107 = arith.constant 0 : index
    %c6_108 = arith.constant 6 : index
    %275 = vector.load %arg3[%c0_107, %c6_108] : memref<32x8xf32, #tpu.memory_space<vmem>>, vector<32x1xf32>
    %276 = vector.broadcast %274 : vector<1x128xf32> to vector<32x128xf32>
    %277 = vector.broadcast %275 : vector<32x1xf32> to vector<32x128xf32>
    %278 = arith.mulf %276, %277 : vector<32x128xf32>
    %279 = arith.addf %240, %278 : vector<32x128xf32>
    %cst_109 = arith.constant 5.000000e-01 : f32
    %280 = vector.broadcast %cst_109 : f32 to vector<32x128xf32>
    %281 = arith.mulf %280, %279 : vector<32x128xf32>
    %282 = math.tanh %281 : vector<32x128xf32>
    %cst_110 = arith.constant 5.000000e-01 : f32
    %283 = vector.broadcast %cst_110 : f32 to vector<32x128xf32>
    %284 = arith.mulf %283, %282 : vector<32x128xf32>
    %cst_111 = arith.constant 5.000000e-01 : f32
    %285 = vector.broadcast %cst_111 : f32 to vector<32x128xf32>
    %286 = arith.addf %284, %285 : vector<32x128xf32>
    %c7 = arith.constant 7 : index
    %c0_112 = arith.constant 0 : index
    %c0_113 = arith.constant 0 : index
    %287 = vector.load %arg4[%c7, %c0_112, %c0_113] : memref<8x8x32xf32, #tpu.memory_space<vmem>>, vector<1x8x32xf32>
    %288 = vector.shape_cast %287 : vector<1x8x32xf32> to vector<8x32xf32>
    %cst_114 = arith.constant dense<0.000000e+00> : vector<8x128xf32>
    %289 = tpu.matmul %288, %286, %cst_114 {dimension_numbers = #tpu.dot_dimension_numbers<[1], [0], [0], [1], [0, 0, 1, 1], [], []>} : vector<8x32xf32>, vector<32x128xf32>, vector<8x128xf32> -> vector<8x128xf32>
    %c7_115 = arith.constant 7 : index
    %c0_116 = arith.constant 0 : index
    %c0_117 = arith.constant 0 : index
    %290 = vector.load %arg5[%c7_115, %c0_116, %c0_117] : memref<8x8x1xf32, #tpu.memory_space<vmem>>, vector<1x8x1xf32>
    %291 = vector.shape_cast %290 : vector<1x8x1xf32> to vector<8x1xf32>
    %292 = vector.broadcast %291 : vector<8x1xf32> to vector<8x128xf32>
    %293 = arith.addf %289, %292 : vector<8x128xf32>
    %cst_118 = arith.constant dense<0xFF800000> : vector<128xf32>
    %294 = vector.multi_reduction <maximumf>, %293, %cst_118 [0] : vector<8x128xf32> to vector<128xf32>
    %295 = vector.shape_cast %294 : vector<128xf32> to vector<1x128xf32>
    %296 = vector.broadcast %295 : vector<1x128xf32> to vector<8x128xf32>
    %297 = arith.subf %293, %296 : vector<8x128xf32>
    %298 = math.exp %297 : vector<8x128xf32>
    %cst_119 = arith.constant dense<0.000000e+00> : vector<128xf32>
    %299 = vector.multi_reduction <add>, %298, %cst_119 [0] : vector<8x128xf32> to vector<128xf32>
    %300 = vector.shape_cast %299 : vector<128xf32> to vector<1x128xf32>
    %301 = math.log %300 : vector<1x128xf32>
    %302 = arith.addf %301, %295 : vector<1x128xf32>
    %303 = vector.extract_strided_slice %0 {offsets = [7, 0], sizes = [1, 128], strides = [1, 1]} : vector<8x128xi32> to vector<1x128xi32>
    %304 = vector.broadcast %6 : vector<8x1xi32> to vector<8x128xi32>
    %305 = vector.broadcast %303 : vector<1x128xi32> to vector<8x128xi32>
    %306 = arith.cmpi eq, %304, %305 : vector<8x128xi32>
    %cst_120 = arith.constant 0.000000e+00 : f32
    %307 = vector.broadcast %cst_120 : f32 to vector<8x128xf32>
    %308 = arith.select %306, %293, %307 : vector<8x128xi1>, vector<8x128xf32>
    %cst_121 = arith.constant dense<0.000000e+00> : vector<128xf32>
    %309 = vector.multi_reduction <add>, %308, %cst_121 [0] : vector<8x128xf32> to vector<128xf32>
    %310 = vector.shape_cast %309 : vector<128xf32> to vector<1x128xf32>
    %311 = arith.addf %273, %310 : vector<1x128xf32>
    %312 = arith.subf %311, %302 : vector<1x128xf32>
    %c0_122 = arith.constant 0 : index
    %c0_123 = arith.constant 0 : index
    %313 = vector.load %arg6[%c0_122, %c0_123] : memref<1x128xf32, #tpu.memory_space<vmem>>, vector<1x128xf32>
    tpu.vector_store %arg6[%c0_122, %c0_123], %312 {strides = array<i32>} : memref<1x128xf32, #tpu.memory_space<vmem>>, vector<1x128xf32>,
    return
  }
  func.func @transform_0(%arg0: i32) -> (i32, i32) {
    %c0_i32 = arith.constant 0 : i32
    %c0_i32_0 = arith.constant 0 : i32
    return %c0_i32, %arg0 : i32, i32
  }
  func.func @transform_1(%arg0: i32) -> (i32, i32) {
    %c0_i32 = arith.constant 0 : i32
    %c0_i32_0 = arith.constant 0 : i32
    %c0_i32_1 = arith.constant 0 : i32
    return %c0_i32, %c0_i32_0 : i32, i32
  }
  func.func @transform_2(%arg0: i32) -> (i32, i32) {
    %c0_i32 = arith.constant 0 : i32
    %c0_i32_0 = arith.constant 0 : i32
    %c0_i32_1 = arith.constant 0 : i32
    return %c0_i32, %c0_i32_0 : i32, i32
  }
  func.func @transform_3(%arg0: i32) -> (i32, i32, i32) {
    %c0_i32 = arith.constant 0 : i32
    %c0_i32_0 = arith.constant 0 : i32
    %c0_i32_1 = arith.constant 0 : i32
    %c0_i32_2 = arith.constant 0 : i32
    return %c0_i32, %c0_i32_0, %c0_i32_1 : i32, i32, i32
  }
  func.func @transform_4(%arg0: i32) -> (i32, i32, i32) {
    %c0_i32 = arith.constant 0 : i32
    %c0_i32_0 = arith.constant 0 : i32
    %c0_i32_1 = arith.constant 0 : i32
    %c0_i32_2 = arith.constant 0 : i32
    return %c0_i32, %c0_i32_0, %c0_i32_1 : i32, i32, i32
  }
  func.func @transform_5(%arg0: i32) -> (i32, i32) {
    %c0_i32 = arith.constant 0 : i32
    %c0_i32_0 = arith.constant 0 : i32
    return %c0_i32, %arg0 : i32, i32
  }
}

</mosaic_0001>

<bundles_post_ra>
// kernel: tpu_custom_call.1
= control target key start
LH: loop header
LB: loop body
LE: loop exit
PB: predicated region body
PF: predicated region fallthrough
CT: control target
= control target key end

     0   :  { %v1038_v2 = vmov 1   ;;  %v1039_v3 = vmov 0   ;;  %s1342_s0 = inlined_call_operand.vmem [shape: s32[8,128], index: 0, kind: input, shape index: {}]   ;;  %s1343_s1 = inlined_call_operand.vmem [shape: f32[32,1], index: 1, kind: input, shape index: {}]   ;;  %s1344_s2 = inlined_call_operand.vmem [shape: f32[32,8], index: 2, kind: input, shape index: {}]   ;;  %s1345_s3 = inlined_call_operand.vmem [shape: f32[8,8,32], index: 3, kind: input, shape index: {}]   ;;  %s1346_s4 = inlined_call_operand.vmem [shape: f32[8,8,1], index: 4, kind: input, shape index: {}]   ;;  %s1347_s5 = inlined_call_operand.hbm [shape: f32[1,128], index: 5, kind: output, shape index: {}]  }
   0x1   :  { %v127_v0 = vld [vmem:[%s1344_s2 + $0x10] sm:$0xff]  ;;  %897 = vset.pattern.permute.xlu0 %v1038_v2  ;;  %896 = vset.pattern.permute.xlu2 %v1039_v3 }
   0x2   :  { %v25_v1 = vld [vmem:[%s1343_s1 + $0x10] sm:$0xff]  ;;  %894 = vset.pattern.permute.xlu1 %v1039_v3  ;;  %245 = vperm.xlu0 %897, %v127_v0  }
   0x3   :  { %10 = vsyncpa [#allocation3], 0  ;;  %142 = vperm.xlu1 %894, %v127_v0   ;;  %39 = vperm.xlu2 %896, %v25_v1   ;;  %v126_v4 = vld [vmem:[%s1344_s2 + $0x8] sm:$0xff]  ;;  %v128_v5 = vld [vmem:[%s1344_s2 + $0x18] sm:$0xff]  ;;  %v1040_v10 = vmov 2   ;;  %v1041_v11 = vmov 3  }
   0x4   :  { %v125_v6 = vld [vmem:[%s1344_s2] sm:$0xff]  ;;  %v26_v7 = vld [vmem:[%s1343_s1 + $0x18] sm:$0xff]  ;;  %v24_v8 = vld [vmem:[%s1343_s1 + $0x8] sm:$0xff]  ;;  %v1042_v12 = vmov 5   ;;  %v1043_v13 = vmov 4   ;;  %v1044_v14 = vmov 6  }
   0x5   :  { %v23_v9 = vld [vmem:[%s1343_s1] sm:$0xff]  ;;  %vm72_vm0 = vcmask 261120   ;;  %s855_s17 = sshll.u32 %s1347_s5, 4  ;;  %s856_s17 = int_to_ptr.hbm [resolvable:$true] %s855_s17 }
   0x6   :  { %v1110_v17 = vld [vmem:[%s1342_s0] sm:$0xff] }
   0x7   :  { %v1113_v19 = vcvt.s32.f32 %v1110_v17 }
   0x9   :  { %v129_v20 = vperm.slane %v1113_v19, 0  ;;  %v1117_v25 = vperm.slane %v1113_v19, 1  ;;  %v1121_v28 = vperm.slane %v1113_v19, 2 }
   0xa   :  { %898 = vset.pattern.permute.xlu0 %v1039_v3 }
   0xb   :  { %895 = vset.pattern.permute.xlu1 %v1038_v2  ;;  %137 = vperm.xlu2 %896, %v126_v4  }
   0xc   :  { %147 = vperm.xlu0 %898, %v128_v5   ;;  %249 = vperm.xlu1 %895, %v128_v5  }
  0x13   :  { %132 = vperm.xlu2 %896, %v125_v6  }
  0x14   :  { %899 = vset.pattern.permute.xlu1 %v1039_v3  ;;  %44 = vperm.xlu0 %898, %v26_v7  }
  0x15   :  { %34 = vperm.xlu1 %899, %v24_v8  }
  0x1b   :  { %901 = vset.pattern.permute.xlu2 %v1040_v10 }
  0x1c   :  { %351 = vperm.xlu2 %901, %v128_v5   ;;  %29 = vperm.xlu0 %898, %v23_v9  }
  0x1d   :  { %900 = vset.pattern.permute.xlu1 %v1038_v2 }
  0x1e   :  { %241 = vperm.xlu1 %900, %v126_v4  }
  0x24   :  { %347 = vperm.xlu2 %901, %v127_v0   ;;  %903 = vset.pattern.permute.xlu0 %v1041_v11 }
  0x25   :  { %453 = vperm.xlu0 %903, %v128_v5  }
  0x26   :  { %237 = vperm.xlu1 %900, %v125_v6  }
  0x2c   :  { %339 = vperm.xlu2 %901, %v125_v6  }
  0x2d   :  { %906 = vset.pattern.permute.xlu0 %v1042_v12 }
  0x2e   :  { %902 = vset.pattern.permute.xlu1 %v1040_v10  ;;  %657 = vperm.xlu0 %906, %v128_v5  }
  0x2f   :  { %343 = vperm.xlu1 %902, %v126_v4  }
  0x34   :  { %905 = vset.pattern.permute.xlu2 %v1043_v13 }
  0x35   :  { %555 = vperm.xlu2 %905, %v128_v5  }
  0x36   :  { %649 = vperm.xlu0 %906, %v126_v4  }
  0x37   :  { %904 = vset.pattern.permute.xlu1 %v1041_v11 }
  0x38   :  { %449 = vperm.xlu1 %904, %v127_v0  }
  0x3d   :  { %551 = vperm.xlu2 %905, %v127_v0  }
  0x3e   :  { %910 = vset.pattern.permute.xlu0 %v1044_v14 }
  0x3f   :  { %755 = vperm.xlu0 %910, %v127_v0  }
  0x40   :  { %445 = vperm.xlu1 %904, %v126_v4  }
  0x45   :  { %547 = vperm.xlu2 %905, %v126_v4  }
  0x47   :  { %914 = vset.pattern.permute.xlu0 %v1039_v3 }
  0x48   :  { %441 = vperm.xlu1 %904, %v125_v6  }
  0x4d   :  { %543 = vperm.xlu2 %905, %v125_v6  }
  0x50   :  { %907 = vset.pattern.permute.xlu1 %v1042_v12 }
  0x51   :  { %653 = vperm.xlu1 %907, %v127_v0  }
  0x55   :  { %909 = vset.pattern.permute.xlu2 %v1042_v12 }
  0x56   :  { %645 = vperm.xlu2 %909, %v125_v6  }
  0x59   :  { %908 = vset.pattern.permute.xlu1 %v1044_v14 }
  0x5a   :  { %759 = vperm.xlu1 %908, %v128_v5  }
  0x5d   :  { %v40_v15 = vpop.permute.xlu2 %39 }
  0x5e   :  { %911 = vset.pattern.permute.xlu2 %v1044_v14  ;;  %v51_v34 = vmul.f32 0.5, %v40_v15 }
  0x5f   :  { %747 = vperm.xlu2 %911, %v125_v6  }
  0x60   :  { %915 = vtanh.f32 %v51_v34 }
  0x62   :  { %751 = vperm.xlu1 %908, %v126_v4  }
  0x65   :  { %v138_v16 = vpop.permute.xlu2 %137 }
  0x66   :  { %v151_v40 = vmul.f32 %v138_v16, %v129_v20  ;;  %v916_v52 = vpop.eup %915 }
  0x67   :  { %913 = vset.pattern.permute.xlu2 %v1039_v3  ;;  %v59_v1 = vmul.f32 0.5, %v916_v52 }
  0x69   :  { %v63_v16 = vadd.f32 0.5, %v59_v1 }
  0x6a   :  { %912 = vset.pattern.permute.xlu1 %v1039_v3 }
  0x6d   :  { %v133_v18 = vpop.permute.xlu2 %132 }
  0x6e   :  { %v150_v58 = vmul.f32 %v133_v18, %v129_v20 }
  0x74   :  { %v246_v21 = vpop.permute.xlu0 %245 }
  0x75   :  { %v143_v22 = vpop.permute.xlu1 %142  ;;  %v254_v27 = vmul.f32 %v246_v21, %v1117_v25 }
  0x76   :  { %v352_v23 = vpop.permute.xlu2 %351  ;;  %v152_v24 = vmul.f32 %v143_v22, %v129_v20 }
  0x77   :  { %v357_v41 = vmul.f32 %v352_v23, %v1121_v28  ;;  %v66_v23 = vld [vmem:[%s1346_s4] sm:$0xff] }
  0x78   :  { %v156_v26 = vadd.f32 %v152_v24, %v40_v15  ;;  %v1138_v15 = vperm.slane %v1113_v19, 4  ;;  %69 = vperm.xlu1 %912, %v66_v23  }
  0x7a   :  { %v258_v31 = vadd.f32 %v254_v27, %v156_v26  ;;  %v160_v36 = vmul.f32 0.5, %v156_v26 }
  0x7c   :  { %v262_v38 = vmul.f32 0.5, %v258_v31  ;;  %917 = vtanh.f32 %v160_v36 }
  0x7e   :  { %v148_v29 = vpop.permute.xlu0 %147  ;;  %v250_v30 = vpop.permute.xlu1 %249  ;;  %919 = vtanh.f32 %v262_v38 }
  0x7f   :  { %v348_v32 = vpop.permute.xlu2 %347  ;;  %v153_v37 = vmul.f32 %v148_v29, %v129_v20  ;;  %v255_v43 = vmul.f32 %v250_v30, %v1117_v25  ;;  %v1141_v20 = vperm.slane %v1113_v19, 3 }
  0x80   :  { %v356_v33 = vmul.f32 %v348_v32, %v1121_v28 }
  0x82   :  { %v1124_v35 = vadd.f32 %v356_v33, %v258_v31  ;;  %v918_v55 = vpop.eup %917 }
  0x83   :  { %v168_v8 = vmul.f32 0.5, %v918_v55 }
  0x84   :  { %v364_v39 = vmul.f32 0.5, %v1124_v35  ;;  %v920_v57 = vpop.eup %919 }
  0x85   :  { %v172_v26 = vadd.f32 0.5, %v168_v8  ;;  %v270_v27 = vmul.f32 0.5, %v920_v57 }
  0x86   :  { %v45_v42 = vpop.permute.xlu0 %44  ;;  %921 = vtanh.f32 %v364_v39 }
  0x87   :  { %v52_v44 = vmul.f32 0.5, %v45_v42  ;;  %v157_v45 = vadd.f32 %v153_v37, %v45_v42  ;;  %v35_v46 = vpop.permute.xlu1 %34  ;;  %v1131_v56 = vpop.permute.xlu2 %339 }
  0x88   :  { %v50_v47 = vmul.f32 0.5, %v35_v46  ;;  %v155_v48 = vadd.f32 %v151_v40, %v35_v46  ;;  %v274_v46 = vadd.f32 0.5, %v270_v27 }
  0x89   :  { %v259_v49 = vadd.f32 %v255_v43, %v157_v45  ;;  %923 = vtanh.f32 %v52_v44  ;;  %v161_v50 = vmul.f32 0.5, %v157_v45 }
  0x8a   :  { %925 = vtanh.f32 %v50_v47  ;;  %v159_v51 = vmul.f32 0.5, %v155_v48 }
  0x8b   :  { %927 = vtanh.f32 %v161_v50  ;;  %v1129_v53 = vadd.f32 %v357_v41, %v259_v49  ;;  %v263_v54 = vmul.f32 0.5, %v259_v49 }
  0x8c   :  { %929 = vtanh.f32 %v159_v51  ;;  %v922_v60 = vpop.eup %921  ;;  %v65_v51 = vld [vmem:[%s1345_s3] sm:$0xff] }
  0x8d   :  { %931 = vtanh.f32 %v263_v54  ;;  %v365_v59 = vmul.f32 0.5, %v1129_v53  ;;  %v372_v34 = vmul.f32 0.5, %v922_v60  ;;  %v354_v54 = vmul.f32 %v1131_v56, %v1121_v28 }
  0x8e   :  { %v30_v61 = vpop.permute.xlu0 %29  ;;  %v1163_v60 = vperm.slane %v1113_v19, 5 }
  0x8f   :  { %v924_v62 = vpop.eup %923  ;;  %v49_v63 = vmul.f32 0.5, %v30_v61  ;;  %v154_v0 = vadd.f32 %v150_v58, %v30_v61  ;;  %933 = vtanh.f32 %v365_v59  ;;  %v556_v30 = vpop.permute.xlu2 %555  ;;  %v869_v58 = vld [vmem:[%s1346_s4 + $0x10] sm:$0xff] }
  0x90   :  { %v926_v2 = vpop.eup %925  ;;  %v242_v3 = vpop.permute.xlu1 %241  ;;  %v60_v4 = vmul.f32 0.5, %v924_v62  ;;  %v561_v37 = vmul.f32 %v556_v30, %v1138_v15  ;;  %282 = vperm.xlu0 %914, %v869_v58  }
  0x91   :  { %v928_v5 = vpop.eup %927  ;;  %935 = vtanh.f32 %v49_v63  ;;  %v158_v6 = vmul.f32 0.5, %v154_v0  ;;  %v253_v7 = vmul.f32 %v242_v3, %v1117_v25  ;;  %v58_v12 = vmul.f32 0.5, %v926_v2 }
  0x92   :  { %v930_v9 = vpop.eup %929  ;;  %v64_v10 = vadd.f32 0.5, %v60_v4  ;;  %v169_v11 = vmul.f32 0.5, %v928_v5 }
  0x93   :  { %v932_v13 = vpop.eup %931  ;;  %v1135_v14 = vadd.f32 %v253_v7, %v155_v48  ;;  %937 = vtanh.f32 %v158_v6  ;;  %v167_v22 = vmul.f32 0.5, %v930_v9  ;;  %v62_v31 = vadd.f32 0.5, %v58_v12 }
  0x94   :  { %88 = vmatpush.msra.mxu0 %v64_v10  ;;  %v173_v18 = vadd.f32 0.5, %v169_v11  ;;  %v271_v21 = vmul.f32 0.5, %v932_v13  ;;  %v376_v48 = vadd.f32 0.5, %v372_v34 }
  0x95   :  { %v934_v24 = vpop.eup %933  ;;  %v261_v29 = vmul.f32 0.5, %v1135_v14  ;;  %v171_v41 = vadd.f32 0.5, %v167_v22 }
  0x96   :  { %89 = vmatpush.msra.mxu0 %v63_v16  ;;  %198 = vmatpush.msra.mxu1 %v173_v18  ;;  %v275_v32 = vadd.f32 0.5, %v271_v21  ;;  %v373_v33 = vmul.f32 0.5, %v934_v24 }
  0x97   :  { %v936_v36 = vpop.eup %935  ;;  %v454_v38 = vpop.permute.xlu0 %453  ;;  %939 = vtanh.f32 %v261_v29 }
  0x98   :  { %v459_v39 = vmul.f32 %v454_v38, %v1141_v20  ;;  %90 = vmatpush.msra.mxu0 %v62_v31  ;;  %v238_v40 = vpop.permute.xlu1 %237  ;;  %199 = vmatpush.msra.mxu1 %v172_v26  ;;  %v377_v42 = vadd.f32 0.5, %v373_v33  ;;  %v57_v43 = vmul.f32 0.5, %v936_v36 }
  0x99   :  { %v938_v44 = vpop.eup %937  ;;  %v252_v45 = vmul.f32 %v238_v40, %v1117_v25  ;;  %300 = vmatpush.msra.mxu2 %v275_v32 }
  0x9a   :  { %v463_v47 = vadd.f32 %v459_v39, %v1129_v53  ;;  %200 = vmatpush.msra.mxu1 %v171_v41  ;;  %402 = vmatpush.msra.mxu3 %v377_v42  ;;  %v166_v49 = vmul.f32 0.5, %v938_v44  ;;  %v61_v50 = vadd.f32 0.5, %v57_v43  ;;  %v865_v53 = vld [vmem:[%s1345_s3 + $0x8] sm:$0xff] }
  0x9b   :  { %v256_v52 = vadd.f32 %v252_v45, %v154_v0  ;;  %301 = vmatpush.msra.mxu2 %v274_v46  ;;  %v552_v0 = vpop.permute.xlu2 %551  ;;  %v866_v42 = vld [vmem:[%s1346_s4 + $0x8] sm:$0xff] }
  0x9c   :  { %403 = vmatpush.msra.mxu3 %v376_v48  ;;  %v170_v25 = vadd.f32 0.5, %v166_v49  ;;  %v565_v55 = vadd.f32 %v561_v37, %v463_v47  ;;  %91 = vmatpush.msra.mxu0 %v61_v50  ;;  %v467_v57 = vmul.f32 0.5, %v463_v47  ;;  %v560_v29 = vmul.f32 %v552_v0, %v1138_v15  ;;  %v871_v47 = vld [vmem:[%s1345_s3 + $0x18] sm:$0xff] }
  0x9d   :  { %v940_v59 = vpop.eup %939  ;;  %864 = vmatmul.msk.f32.vlgmr.msra.gmra.mxu0 %vm72_vm0, %v65_v51  ;;  %v260_v56 = vmul.f32 0.5, %v256_v52  ;;  %v1166_v61 = vadd.f32 %v354_v54, %v256_v52  ;;  %180 = vperm.xlu2 %913, %v866_v42  }
  0x9e   :  { %201 = vmatpush.msra.mxu1 %v170_v25  ;;  %v269_v62 = vmul.f32 0.5, %v940_v59  ;;  %941 = vtanh.f32 %v467_v57  ;;  %v569_v63 = vmul.f32 0.5, %v565_v55 }
  0x9f   :  { %943 = vtanh.f32 %v260_v56  ;;  %867 = vmatmul.msk.f32.vlgmr.msra.gmra.mxu1 %vm72_vm0, %v865_v53  ;;  %v362_v6 = vmul.f32 0.5, %v1166_v61 }
  0xa0   :  { %v658_v1 = vpop.permute.xlu0 %657  ;;  %v273_v2 = vadd.f32 0.5, %v269_v62  ;;  %945 = vtanh.f32 %v569_v63  ;;  %v878_v62 = vld [vmem:[%s1346_s4 + $0x28] sm:$0xff] }
  0xa1   :  { %v663_v3 = vmul.f32 %v658_v1, %v1163_v60  ;;  %v344_v4 = vpop.permute.xlu1 %343  ;;  %947 = vtanh.f32 %v362_v6 }
  0xa2   :  { %v355_v5 = vmul.f32 %v344_v4, %v1121_v28  ;;  %302 = vmatpush.msra.mxu2 %v273_v2  ;;  %v872_v28 = vld [vmem:[%s1346_s4 + $0x18] sm:$0xff] }
  0xa3   :  { %v1172_v7 = vadd.f32 %v663_v3, %v565_v55  ;;  %384 = vperm.xlu1 %912, %v872_v28   ;;  %v548_v26 = vpop.permute.xlu2 %547 }
  0xa4   :  { %v942_v8 = vpop.eup %941  ;;  %v359_v9 = vadd.f32 %v355_v5, %v1135_v14  ;;  %v868_v14 = vld [vmem:[%s1345_s3 + $0x10] sm:$0xff]  ;;  %v559_v49 = vmul.f32 %v548_v26, %v1138_v15 }
  0xa5   :  { %v944_v10 = vpop.eup %943  ;;  %v475_v11 = vmul.f32 0.5, %v942_v8  ;;  %v671_v12 = vmul.f32 0.5, %v1172_v7 }
  0xa6   :  { %v946_v13 = vpop.eup %945  ;;  %v268_v16 = vmul.f32 0.5, %v944_v10  ;;  %v363_v18 = vmul.f32 0.5, %v359_v9 }
  0xa7   :  { %v479_v21 = vadd.f32 0.5, %v475_v11  ;;  %v577_v22 = vmul.f32 0.5, %v946_v13  ;;  %949 = vtanh.f32 %v671_v12  ;;  %v948_v31 = vpop.eup %947 }
  0xa8   :  { %v272_v23 = vadd.f32 0.5, %v268_v16  ;;  %951 = vtanh.f32 %v363_v18  ;;  %v370_v39 = vmul.f32 0.5, %v948_v31  ;;  %v650_v57 = vpop.permute.xlu0 %649 }
  0xa9   :  { %504 = vmatpush.msrb.mxu0 %v479_v21  ;;  %v581_v24 = vadd.f32 0.5, %v577_v22  ;;  %v661_v0 = vmul.f32 %v650_v57, %v1163_v60 }
  0xaa   :  { %v450_v27 = vpop.permute.xlu1 %449  ;;  %303 = vmatpush.msra.mxu2 %v272_v23  ;;  %v374_v46 = vadd.f32 0.5, %v370_v39 }
  0xab   :  { %v458_v30 = vmul.f32 %v450_v27, %v1141_v20  ;;  %870 = vmatmul.msk.f32.vlgmr.msra.gmra.mxu2 %vm72_vm0, %v868_v14  ;;  %606 = vmatpush.msrb.mxu1 %v581_v24  ;;  %v544_v48 = vpop.permute.xlu2 %543  ;;  %v884_v27 = vld [vmem:[%s1346_s4 + $0x38] sm:$0xff] }
  0xac   :  { %588 = vperm.xlu1 %912, %v878_v62   ;;  %v558_v3 = vmul.f32 %v544_v48, %v1138_v15  ;;  %v745_v15 = vperm.slane %v1113_v19, 6  ;;  %792 = vperm.xlu0 %914, %v884_v27  }
  0xad   :  { %v950_v32 = vpop.eup %949  ;;  %v462_v33 = vadd.f32 %v458_v30, %v1124_v35 }
  0xae   :  { %v952_v34 = vpop.eup %951  ;;  %v679_v36 = vmul.f32 0.5, %v950_v32 }
  0xaf   :  { %v1186_v37 = vadd.f32 %v560_v29, %v462_v33  ;;  %v371_v38 = vmul.f32 0.5, %v952_v34  ;;  %v466_v40 = vmul.f32 0.5, %v462_v33  ;;  %v875_v33 = vld [vmem:[%s1346_s4 + $0x20] sm:$0xff] }
  0xb0   :  { %v683_v41 = vadd.f32 0.5, %v679_v36  ;;  %v874_v36 = vld [vmem:[%s1345_s3 + $0x20] sm:$0xff]  ;;  %486 = vperm.xlu2 %913, %v875_v33  }
  0xb1   :  { %v375_v43 = vadd.f32 0.5, %v371_v38  ;;  %953 = vtanh.f32 %v466_v40  ;;  %v568_v44 = vmul.f32 0.5, %v1186_v37  ;;  %v756_v18 = vpop.permute.xlu0 %755 }
  0xb2   :  { %v446_v45 = vpop.permute.xlu1 %445  ;;  %708 = vmatpush.msrb.mxu2 %v683_v41  ;;  %v764_v14 = vmul.f32 %v756_v18, %v745_v15  ;;  %v877_v41 = vld [vmem:[%s1345_s3 + $0x28] sm:$0xff] }
  0xb3   :  { %v457_v35 = vmul.f32 %v446_v45, %v1141_v20  ;;  %404 = vmatpush.msra.mxu3 %v375_v43  ;;  %955 = vtanh.f32 %v568_v44  ;;  %v646_v1 = vpop.permute.xlu2 %645 }
  0xb4   :  { %v660_v4 = vmul.f32 %v646_v1, %v1163_v60 }
  0xb5   :  { %v461_v50 = vadd.f32 %v457_v35, %v359_v9  ;;  %405 = vmatpush.msra.mxu3 %v374_v46  ;;  %v881_v46 = vld [vmem:[%s1346_s4 + $0x30] sm:$0xff] }
  0xb6   :  { %873 = vmatmul.msk.f32.vlgmr.msra.gmra.mxu3 %vm72_vm0, %v871_v47 }
  0xb7   :  { %v954_v51 = vpop.eup %953  ;;  %v563_v52 = vadd.f32 %v559_v49, %v461_v50  ;;  %v465_v54 = vmul.f32 0.5, %v461_v50 }
  0xb8   :  { %v474_v25 = vmul.f32 0.5, %v954_v51  ;;  %690 = vperm.xlu2 %913, %v881_v46  }
  0xb9   :  { %v956_v55 = vpop.eup %955  ;;  %957 = vtanh.f32 %v465_v54  ;;  %v567_v53 = vmul.f32 0.5, %v563_v52  ;;  %v1206_v10 = vadd.f32 %v661_v0, %v563_v52 }
  0xba   :  { %v442_v58 = vpop.permute.xlu1 %441  ;;  %v478_v59 = vadd.f32 0.5, %v474_v25  ;;  %v576_v56 = vmul.f32 0.5, %v956_v55 }
  0xbb   :  { %v456_v63 = vmul.f32 %v442_v58, %v1141_v20  ;;  %959 = vtanh.f32 %v567_v53  ;;  %v669_v23 = vmul.f32 0.5, %v1206_v10 }
  0xbc   :  { %505 = vmatpush.msrb.mxu0 %v478_v59  ;;  %v580_v2 = vadd.f32 0.5, %v576_v56  ;;  %v880_v56 = vld [vmem:[%s1345_s3 + $0x30] sm:$0xff] }
  0xbd   :  { %v460_v5 = vadd.f32 %v456_v63, %v1166_v61 }
  0xbe   :  { %607 = vmatpush.msrb.mxu1 %v580_v2 }
  0xbf   :  { %v958_v6 = vpop.eup %957  ;;  %v562_v8 = vadd.f32 %v558_v3, %v460_v5  ;;  %v464_v9 = vmul.f32 0.5, %v460_v5 }
  0xc0   :  { %v473_v20 = vmul.f32 0.5, %v958_v6 }
  0xc1   :  { %v960_v11 = vpop.eup %959  ;;  %v664_v12 = vadd.f32 %v660_v4, %v562_v8  ;;  %961 = vtanh.f32 %v464_v9  ;;  %v566_v13 = vmul.f32 0.5, %v562_v8 }
  0xc2   :  { %v477_v16 = vadd.f32 0.5, %v473_v20  ;;  %v575_v21 = vmul.f32 0.5, %v960_v11  ;;  %v883_v20 = vld [vmem:[%s1345_s3 + $0x38] sm:$0xff] }
  0xc3   :  { %v654_v22 = vpop.permute.xlu1 %653  ;;  %963 = vtanh.f32 %v566_v13  ;;  %v668_v24 = vmul.f32 0.5, %v664_v12 }
  0xc4   :  { %v662_v61 = vmul.f32 %v654_v22, %v1163_v60  ;;  %506 = vmatpush.msrb.mxu0 %v477_v16  ;;  %v579_v28 = vadd.f32 0.5, %v575_v21  ;;  %965 = vtanh.f32 %v669_v23  ;;  %v748_v60 = vpop.permute.xlu2 %747 }
  0xc5   :  { %967 = vtanh.f32 %v668_v24  ;;  %v762_v38 = vmul.f32 %v748_v60, %v745_v15 }
  0xc6   :  { %v666_v26 = vadd.f32 %v662_v61, %v1186_v37  ;;  %608 = vmatpush.msrb.mxu1 %v579_v28 }
  0xc7   :  { %v962_v29 = vpop.eup %961  ;;  %v766_v48 = vadd.f32 %v762_v38, %v664_v12 }
  0xc8   :  { %v472_v19 = vmul.f32 0.5, %v962_v29  ;;  %v670_v30 = vmul.f32 0.5, %v666_v26  ;;  %v768_v32 = vadd.f32 %v764_v14, %v666_v26 }
  0xc9   :  { %v964_v31 = vpop.eup %963  ;;  %v770_v55 = vmul.f32 0.5, %v766_v48 }
  0xca   :  { %v476_v34 = vadd.f32 0.5, %v472_v19  ;;  %v574_v37 = vmul.f32 0.5, %v964_v31  ;;  %969 = vtanh.f32 %v670_v30  ;;  %v772_v42 = vmul.f32 0.5, %v768_v32  ;;  %v966_v44 = vpop.eup %965 }
  0xcb   :  { %v968_v45 = vpop.eup %967  ;;  %v677_v51 = vmul.f32 0.5, %v966_v44 }
  0xcc   :  { %v760_v39 = vpop.permute.xlu1 %759  ;;  %507 = vmatpush.msrb.mxu0 %v476_v34  ;;  %v578_v40 = vadd.f32 0.5, %v574_v37  ;;  %971 = vtanh.f32 %v772_v42  ;;  %v676_v54 = vmul.f32 0.5, %v968_v45 }
  0xcd   :  { %v765_v43 = vmul.f32 %v760_v39, %v745_v15  ;;  %876 = vmatmul.msk.f32.vlgmr.msrb.gmra.mxu0 %vm72_vm0, %v874_v36 }
  0xce   :  { %609 = vmatpush.msrb.mxu1 %v578_v40  ;;  %v680_v59 = vadd.f32 0.5, %v676_v54 }
  0xcf   :  { %v769_v35 = vadd.f32 %v765_v43, %v1172_v7  ;;  %879 = vmatmul.msk.f32.vlgmr.msrb.gmra.mxu1 %vm72_vm0, %v877_v41  ;;  %v681_v7 = vadd.f32 0.5, %v677_v51 }
  0xd0   :  { %v970_v47 = vpop.eup %969 }
  0xd1   :  { %v773_v49 = vmul.f32 0.5, %v769_v35  ;;  %v678_v50 = vmul.f32 0.5, %v970_v47 }
  0xd2   :  { %v972_v53 = vpop.eup %971 }
  0xd3   :  { %973 = vtanh.f32 %v773_v49  ;;  %v682_v52 = vadd.f32 0.5, %v678_v50  ;;  %v780_v1 = vmul.f32 0.5, %v972_v53 }
  0xd4   :  { %v752_v25 = vpop.permute.xlu1 %751  ;;  %975 = vtanh.f32 %v770_v55 }
  0xd5   :  { %v763_v57 = vmul.f32 %v752_v25, %v745_v15  ;;  %709 = vmatpush.msrb.mxu2 %v682_v52  ;;  %v784_v3 = vadd.f32 0.5, %v780_v1  ;;  %v47_v25 = vlaneseq }
  0xd7   :  { %v767_v58 = vadd.f32 %v763_v57, %v1206_v10  ;;  %710 = vmatpush.msrb.mxu2 %v681_v7 }
  0xd9   :  { %v974_v62 = vpop.eup %973  ;;  %v771_v63 = vmul.f32 0.5, %v767_v58  ;;  %711 = vmatpush.msrb.mxu2 %v680_v59 }
  0xda   :  { %882 = vmatmul.msk.f32.vlgmr.msrb.gmra.mxu2 %vm72_vm0, %v880_v56  ;;  %v781_v0 = vmul.f32 0.5, %v974_v62  ;;  %v976_v4 = vpop.eup %975  ;;  %v1271_v56 = vshrl.u32 %v47_v25, 7  ;;  %v114_v62 = vperm.slane %v1110_v17, 0 }
  0xdb   :  { %977 = vtanh.f32 %v771_v63  ;;  %v778_v8 = vmul.f32 0.5, %v976_v4 }
  0xdc   :  { %v785_v2 = vadd.f32 0.5, %v781_v0  ;;  %vm115_vm1 = vcmp.eq.s32.totalorder %v1271_v56, %v114_v62 }
  0xdd   :  { %v782_v10 = vadd.f32 0.5, %v778_v8 }
  0xde   :  { %810 = vmatpush.msrb.mxu3 %v785_v2 }
  0xe0   :  { %811 = vmatpush.msrb.mxu3 %v784_v3 }
  0xe1   :  { %v978_v5 = vpop.eup %977 }
  0xe2   :  { %v779_v6 = vmul.f32 0.5, %v978_v5 }
  0xe4   :  { %v783_v9 = vadd.f32 0.5, %v779_v6 }
  0xe6   :  { %812 = vmatpush.msrb.mxu3 %v783_v9 }
  0xe8   :  { %813 = vmatpush.msrb.mxu3 %v782_v10  ;;  %v224_v10 = vperm.slane %v1110_v17, 1 }
  0xe9   :  { %885 = vmatmul.msk.f32.vlgmr.msrb.gmra.mxu3 %vm72_vm0, %v883_v20 }
  0xea   :  { %v70_v11 = vpop.permute.xlu1 %69  ;;  %vm225_vm2 = vcmp.eq.s32.totalorder %v1271_v56, %v224_v10 }
  0xf7   :  { %v181_v16 = vpop.permute.xlu2 %180 }
 0x102   :  { %v283_v27 = vpop.permute.xlu0 %282 }
 0x10a   :  { %v487_v58 = vpop.permute.xlu2 %486 }
 0x115   :  { %v385_v40 = vpop.permute.xlu1 %384 }
 0x11a   :  { %v93_v12 = vpop.f32.mrf.mxu0 }
 0x11b   :  { %v1239_v13 = vadd.f32 %v93_v12, %v70_v11 }
 0x11c   :  { %v203_v18 = vpop.f32.mrf.mxu1 }
 0x11d   :  { %v96_v21 = vrot.slane %v1239_v13, 4  ;;  %v1242_v15 = vadd.f32 %v203_v18, %v181_v16  ;;  %v116_v18 = vsel %vm115_vm1, %v1239_v13, 0.0 }
 0x11e   :  { %v589_v0 = vpop.permute.xlu1 %588 }
 0x11f   :  { %v97_v22 = vmax.f32 %v1239_v13, %v96_v21  ;;  %v206_v61 = vrot.slane %v1242_v15, 4 }
 0x121   :  { %v98_v28 = vrot.slane %v97_v22, 2  ;;  %v207_v23 = vmax.f32 %v1242_v15, %v206_v61 }
 0x123   :  { %v99_v14 = vmax.f32 %v97_v22, %v98_v28  ;;  %v208_v24 = vrot.slane %v207_v23, 2 }
 0x125   :  { %v100_v26 = vrot.slane %v99_v14, 1  ;;  %v209_v29 = vmax.f32 %v207_v23, %v208_v24  ;;  %v117_v24 = vrot.slane %v116_v18, 4 }
 0x127   :  { %v1247_v30 = vmax.f32 %v99_v14, %v100_v26  ;;  %v210_v32 = vrot.slane %v209_v29, 1 }
 0x129   :  { %v102_v33 = vsub.f32 %v1239_v13, %v1247_v30  ;;  %v1255_v37 = vmax.f32 %v209_v29, %v210_v32 }
 0x12b   :  { %v103_v38 = vmul.f32 1.442695, %v102_v33  ;;  %v212_v42 = vsub.f32 %v1242_v15, %v1255_v37 }
 0x12d   :  { %979 = vpow2.f32 %v103_v38  ;;  %v213_v35 = vmul.f32 1.442695, %v212_v42  ;;  %v118_v38 = vadd.f32 %v117_v24, %v116_v18 }
 0x12e   :  { %v305_v19 = vpop.f32.mrf.mxu2 }
 0x12f   :  { %v1249_v31 = vadd.f32 %v305_v19, %v283_v27  ;;  %981 = vpow2.f32 %v213_v35  ;;  %v326_v27 = vperm.slane %v1110_v17, 2 }
 0x131   :  { %v308_v60 = vrot.slane %v1249_v31, 4  ;;  %vm327_vm3 = vcmp.eq.s32.totalorder %v1271_v56, %v326_v27 }
 0x133   :  { %v309_v34 = vmax.f32 %v1249_v31, %v308_v60  ;;  %v980_v49 = vpop.eup %979  ;;  %v226_v60 = vsel %vm225_vm2, %v1242_v15, 0.0 }
 0x134   :  { %v105_v52 = vrot.slane %v980_v49, 4 }
 0x135   :  { %v310_v36 = vrot.slane %v309_v34, 2  ;;  %v982_v7 = vpop.eup %981 }
 0x136   :  { %v106_v53 = vadd.f32 %v980_v49, %v105_v52  ;;  %v215_v1 = vrot.slane %v982_v7, 4  ;;  %v119_v49 = vrot.slane %v118_v38, 2  ;;  %v691_v52 = vpop.permute.xlu2 %690 }
 0x137   :  { %v311_v39 = vmax.f32 %v309_v34, %v310_v36 }
 0x138   :  { %v107_v3 = vrot.slane %v106_v53, 2  ;;  %v216_v9 = vadd.f32 %v982_v7, %v215_v1 }
 0x139   :  { %v407_v41 = vpop.f32.mrf.mxu3  ;;  %v312_v44 = vrot.slane %v311_v39, 1 }
 0x13a   :  { %v1259_v43 = vadd.f32 %v407_v41, %v385_v40  ;;  %v108_v12 = vadd.f32 %v107_v3, %v106_v53  ;;  %v217_v61 = vrot.slane %v216_v9, 2  ;;  %v227_v40 = vrot.slane %v226_v60, 4 }
 0x13b   :  { %v1263_v47 = vmax.f32 %v311_v39, %v312_v44 }
 0x13c   :  { %v410_v45 = vrot.slane %v1259_v43, 4  ;;  %v109_v14 = vrot.slane %v108_v12, 1  ;;  %v218_v13 = vadd.f32 %v217_v61, %v216_v9 }
 0x13d   :  { %v314_v51 = vsub.f32 %v1249_v31, %v1263_v47 }
 0x13e   :  { %v411_v46 = vmax.f32 %v1259_v43, %v410_v45  ;;  %v110_v36 = vadd.f32 %v109_v14, %v108_v12  ;;  %v219_v45 = vrot.slane %v218_v13, 1 }
 0x13f   :  { %v315_v57 = vmul.f32 1.442695, %v314_v51 }
 0x140   :  { %v412_v48 = vrot.slane %v411_v46, 2  ;;  %v220_v7 = vadd.f32 %v219_v45, %v218_v13 }
 0x141   :  { %983 = vpow2.f32 %v315_v57 }
 0x142   :  { %v413_v50 = vmax.f32 %v411_v46, %v412_v48  ;;  %v328_v48 = vsel %vm327_vm3, %v1249_v31, 0.0 }
 0x143   :  { %v329_v53 = vrot.slane %v328_v48, 4 }
 0x144   :  { %v414_v54 = vrot.slane %v413_v50, 1 }
 0x146   :  { %v1267_v55 = vmax.f32 %v413_v50, %v414_v54  ;;  %v228_v50 = vadd.f32 %v227_v40, %v226_v60 }
 0x147   :  { %v984_v16 = vpop.eup %983 }
 0x148   :  { %v416_v59 = vsub.f32 %v1259_v43, %v1267_v55  ;;  %v317_v26 = vrot.slane %v984_v16, 4 }
 0x14a   :  { %v509_v63 = vpop.f32.mrf.mxu0  ;;  %v417_v5 = vmul.f32 1.442695, %v416_v59  ;;  %v318_v39 = vadd.f32 %v984_v16, %v317_v26 }
 0x14b   :  { %v1274_v2 = vadd.f32 %v509_v63, %v487_v58  ;;  %v428_v58 = vperm.slane %v1110_v17, 3  ;;  %v120_v63 = vadd.f32 %v119_v49, %v118_v38  ;;  %v632_v38 = vperm.slane %v1110_v17, 5 }
 0x14c   :  { %v611_v4 = vpop.f32.mrf.mxu1  ;;  %985 = vpow2.f32 %v417_v5  ;;  %v319_v46 = vrot.slane %v318_v39, 2  ;;  %v330_v5 = vadd.f32 %v329_v53, %v328_v48 }
 0x14d   :  { %v512_v6 = vrot.slane %v1274_v2, 4  ;;  %v1277_v8 = vadd.f32 %v611_v4, %v589_v0  ;;  %987 = vlog2.f32 %v110_v36  ;;  %v229_v0 = vrot.slane %v228_v50, 2 }
 0x14e   :  { %v320_v59 = vadd.f32 %v319_v46, %v318_v39  ;;  %vm429_vm4 = vcmp.eq.s32.totalorder %v1271_v56, %v428_v58  ;;  %vm633_vm6 = vcmp.eq.s32.totalorder %v1271_v56, %v632_v38 }
 0x14f   :  { %v513_v20 = vmax.f32 %v1274_v2, %v512_v6  ;;  %v614_v11 = vrot.slane %v1277_v8, 4  ;;  %v230_v12 = vadd.f32 %v229_v0, %v228_v50  ;;  %v430_v18 = vsel %vm429_vm4, %v1259_v43, 0.0 }
 0x150   :  { %v321_v6 = vrot.slane %v320_v59, 1 }
 0x151   :  { %v514_v21 = vrot.slane %v513_v20, 2  ;;  %v615_v22 = vmax.f32 %v1277_v8, %v614_v11  ;;  %v121_v11 = vrot.slane %v120_v63, 1  ;;  %v231_v60 = vrot.slane %v230_v12, 1 }
 0x152   :  { %v986_v32 = vpop.eup %985  ;;  %v322_v14 = vadd.f32 %v321_v6, %v320_v59 }
 0x153   :  { %v515_v28 = vmax.f32 %v513_v20, %v514_v21  ;;  %v616_v23 = vrot.slane %v615_v22, 2  ;;  %v419_v44 = vrot.slane %v986_v32, 4  ;;  %v988_v31 = vpop.eup %987 }
 0x154   :  { %v112_v20 = vmul.f32 0.6931472, %v988_v31 }
 0x155   :  { %v516_v29 = vrot.slane %v515_v28, 1  ;;  %v617_v19 = vmax.f32 %v615_v22, %v616_v23  ;;  %v420_v25 = vadd.f32 %v986_v32, %v419_v44  ;;  %v530_v23 = vperm.slane %v1110_v17, 4 }
 0x156   :  { %v431_v32 = vrot.slane %v430_v18, 4 }
 0x157   :  { %v1288_v33 = vmax.f32 %v515_v28, %v516_v29  ;;  %v618_v34 = vrot.slane %v617_v19, 1  ;;  %v421_v1 = vrot.slane %v420_v25, 2  ;;  %v331_v28 = vrot.slane %v330_v5, 2 }
 0x158   :  { %v113_v29 = vadd.f32 %v112_v20, %v1247_v30  ;;  %vm531_vm5 = vcmp.eq.s32.totalorder %v1271_v56, %v530_v23 }
 0x159   :  { %v518_v41 = vsub.f32 %v1274_v2, %v1288_v33  ;;  %v1293_v42 = vmax.f32 %v617_v19, %v618_v34  ;;  %v422_v16 = vadd.f32 %v421_v1, %v420_v25  ;;  %v122_v19 = vadd.f32 %v121_v11, %v120_v63 }
 0x15a   :  { %v332_v43 = vadd.f32 %v331_v28, %v330_v5  ;;  %v532_v49 = vsel %vm531_vm5, %v1274_v2, 0.0 }
 0x15b   :  { %v519_v35 = vmul.f32 1.442695, %v518_v41  ;;  %v620_v15 = vsub.f32 %v1277_v8, %v1293_v42  ;;  %v423_v13 = vrot.slane %v422_v16, 1  ;;  %v793_v41 = vpop.permute.xlu0 %792  ;;  %v124_v45 = vsub.f32 %v122_v19, %v113_v29 }
 0x15c   :  { %v333_v25 = vrot.slane %v332_v43, 1  ;;  %v533_v58 = vrot.slane %v532_v49, 4 }
 0x15d   :  { %989 = vpow2.f32 %v519_v35  ;;  %v621_v51 = vmul.f32 1.442695, %v620_v15  ;;  %v713_v54 = vpop.f32.mrf.mxu2  ;;  %v232_v35 = vadd.f32 %v231_v60, %v230_v12  ;;  %v432_v15 = vadd.f32 %v431_v32, %v430_v18 }
 0x15e   :  { %v1298_v57 = vadd.f32 %v713_v54, %v691_v52  ;;  %v424_v48 = vadd.f32 %v423_v13, %v422_v16  ;;  %v334_v31 = vadd.f32 %v333_v25, %v332_v43  ;;  %v534_v6 = vadd.f32 %v533_v58, %v532_v49 }
 0x15f   :  { %991 = vpow2.f32 %v621_v51  ;;  %v233_v53 = vadd.f32 %v232_v35, %v124_v45  ;;  %v433_v63 = vrot.slane %v432_v15, 2 }
 0x160   :  { %v716_v62 = vrot.slane %v1298_v57, 4  ;;  %993 = vlog2.f32 %v220_v7 }
 0x161   :  { %995 = vlog2.f32 %v322_v14 }
 0x162   :  { %v717_v3 = vmax.f32 %v1298_v57, %v716_v62 }
 0x163   :  { %v990_v4 = vpop.eup %989 }
 0x164   :  { %v521_v9 = vrot.slane %v990_v4, 4  ;;  %v718_v10 = vrot.slane %v717_v3, 2 }
 0x165   :  { %v992_v61 = vpop.eup %991 }
 0x166   :  { %v522_v21 = vadd.f32 %v990_v4, %v521_v9  ;;  %v719_v22 = vmax.f32 %v717_v3, %v718_v10  ;;  %v994_v27 = vpop.eup %993  ;;  %v623_v34 = vrot.slane %v992_v61, 4  ;;  %v634_v3 = vsel %vm633_vm6, %v1277_v8, 0.0 }
 0x167   :  { %v222_v39 = vmul.f32 0.6931472, %v994_v27  ;;  %v996_v62 = vpop.eup %995  ;;  %v434_v10 = vadd.f32 %v433_v63, %v432_v15  ;;  %v635_v12 = vrot.slane %v634_v3, 4  ;;  %v535_v8 = vrot.slane %v534_v6, 2 }
 0x168   :  { %v523_v24 = vrot.slane %v522_v21, 2  ;;  %v720_v26 = vrot.slane %v719_v22, 1  ;;  %v624_v50 = vadd.f32 %v992_v61, %v623_v34  ;;  %v324_v5 = vmul.f32 0.6931472, %v996_v62 }
 0x169   :  { %v223_v54 = vadd.f32 %v222_v39, %v1255_v37  ;;  %v734_v37 = vperm.slane %v1110_v17, 6  ;;  %v435_v17 = vrot.slane %v434_v10, 1  ;;  %v636_v29 = vadd.f32 %v635_v12, %v634_v3 }
 0x16a   :  { %v1307_v36 = vmax.f32 %v719_v22, %v720_v26  ;;  %v524_v40 = vadd.f32 %v523_v24, %v522_v21  ;;  %v625_v0 = vrot.slane %v624_v50, 2  ;;  %v325_v22 = vadd.f32 %v324_v5, %v1263_v47  ;;  %v1011_v24 = vld [vmem:[%s1342_s0] sm:$0xff]  ;;  %s1045_s0 = smov [#allocation2]  }
 0x16b   :  { %v234_v4 = vsub.f32 %v233_v53, %v223_v54  ;;  %vm735_vm7 = vcmp.eq.s32.totalorder %v1271_v56, %v734_v37  ;;  %v836_v26 = vperm.slane %v1011_v24, 7  ;;  %v536_v13 = vadd.f32 %v535_v8, %v534_v6  ;;  %s853_s14 = sshll.u32 %s1045_s0, 4  ;;  %s854_s14 = int_to_ptr.vmem [resolvable:$true] %s853_s14 }
 0x16c   :  { %v722_v44 = vsub.f32 %v1298_v57, %v1307_v36  ;;  %v815_v30 = vpop.f32.mrf.mxu3  ;;  %v525_v7 = vrot.slane %v524_v40, 1  ;;  %v626_v20 = vadd.f32 %v625_v0, %v624_v50  ;;  %v736_v60 = vsel %vm735_vm7, %v1298_v57, 0.0 }
 0x16d   :  { %v1313_v46 = vadd.f32 %v815_v30, %v793_v41  ;;  %v335_v61 = vadd.f32 %v334_v31, %v234_v4  ;;  %v436_v38 = vadd.f32 %v435_v17, %v434_v10  ;;  %vm837_vm8 = vcmp.eq.s32.totalorder %v1271_v56, %v836_v26 }
 0x16e   :  { %v723_v51 = vmul.f32 1.442695, %v722_v44  ;;  %v526_v1 = vadd.f32 %v525_v7, %v524_v40  ;;  %v627_v23 = vrot.slane %v626_v20, 1  ;;  %v637_v44 = vrot.slane %v636_v29, 2 }
 0x16f   :  { %v818_v52 = vrot.slane %v1313_v46, 4  ;;  %v336_v32 = vsub.f32 %v335_v61, %v325_v22  ;;  %v737_v30 = vrot.slane %v736_v60, 4  ;;  %v838_v57 = vsel %vm837_vm8, %v1313_v46, 0.0 }
 0x170   :  { %997 = vpow2.f32 %v723_v51  ;;  %v628_v39 = vadd.f32 %v627_v23, %v626_v20  ;;  %v638_v51 = vadd.f32 %v637_v44, %v636_v29  ;;  %v839_v7 = vrot.slane %v838_v57, 4 }
 0x171   :  { %v819_v59 = vmax.f32 %v1313_v46, %v818_v52  ;;  %999 = vlog2.f32 %v424_v48  ;;  %v437_v35 = vadd.f32 %v436_v38, %v336_v32  ;;  %v537_v48 = vrot.slane %v536_v13, 1 }
 0x172   :  { %1001 = vlog2.f32 %v526_v1  ;;  %v738_v52 = vadd.f32 %v737_v30, %v736_v60  ;;  %v639_v58 = vrot.slane %v638_v51, 1 }
 0x173   :  { %v820_v2 = vrot.slane %v819_v59, 2  ;;  %v538_v25 = vadd.f32 %v537_v48, %v536_v13 }
 0x174   :  { %v640_v1 = vadd.f32 %v639_v58, %v638_v51 }
 0x175   :  { %v821_v9 = vmax.f32 %v819_v59, %v820_v2  ;;  %v739_v59 = vrot.slane %v738_v52, 2  ;;  %v840_v2 = vadd.f32 %v839_v7, %v838_v57 }
 0x176   :  { %v998_v11 = vpop.eup %997 }
 0x177   :  { %v822_v16 = vrot.slane %v821_v9, 1  ;;  %v1000_v18 = vpop.eup %999  ;;  %v725_v21 = vrot.slane %v998_v11, 4  ;;  %v740_v3 = vadd.f32 %v739_v59, %v738_v52  ;;  %v841_v5 = vrot.slane %v840_v2, 2 }
 0x178   :  { %v426_v27 = vmul.f32 0.6931472, %v1000_v18  ;;  %v1002_v43 = vpop.eup %1001 }
 0x179   :  { %v1324_v28 = vmax.f32 %v821_v9, %v822_v16  ;;  %v726_v14 = vadd.f32 %v998_v11, %v725_v21  ;;  %v528_v15 = vmul.f32 0.6931472, %v1002_v43  ;;  %v741_v10 = vrot.slane %v740_v3, 1 }
 0x17a   :  { %v427_v41 = vadd.f32 %v426_v27, %v1267_v55  ;;  %v842_v16 = vadd.f32 %v841_v5, %v840_v2 }
 0x17b   :  { %v824_v19 = vsub.f32 %v1313_v46, %v1324_v28  ;;  %v727_v47 = vrot.slane %v726_v14, 2  ;;  %v529_v56 = vadd.f32 %v528_v15, %v1288_v33  ;;  %v742_v21 = vadd.f32 %v741_v10, %v740_v3 }
 0x17c   :  { %v438_v50 = vsub.f32 %v437_v35, %v427_v41  ;;  %v843_v61 = vrot.slane %v842_v16, 1 }
 0x17d   :  { %v825_v34 = vmul.f32 1.442695, %v824_v19  ;;  %v728_v40 = vadd.f32 %v727_v47, %v726_v14 }
 0x17e   :  { %v539_v53 = vadd.f32 %v538_v25, %v438_v50  ;;  %v844_v14 = vadd.f32 %v843_v61, %v842_v16 }
 0x17f   :  { %1003 = vpow2.f32 %v825_v34  ;;  %v729_v45 = vrot.slane %v728_v40, 1 }
 0x180   :  { %1005 = vlog2.f32 %v628_v39  ;;  %v540_v0 = vsub.f32 %v539_v53, %v529_v56 }
 0x181   :  { %v730_v49 = vadd.f32 %v729_v45, %v728_v40 }
 0x182   :  { %v641_v6 = vadd.f32 %v640_v1, %v540_v0 }
 0x183   :  { %1007 = vlog2.f32 %v730_v49 }
 0x185   :  { %v1004_v54 = vpop.eup %1003 }
 0x186   :  { %v827_v55 = vrot.slane %v1004_v54, 4  ;;  %v1006_v62 = vpop.eup %1005 }
 0x187   :  { %v630_v46 = vmul.f32 0.6931472, %v1006_v62 }
 0x188   :  { %v828_v63 = vadd.f32 %v1004_v54, %v827_v55 }
 0x189   :  { %v1008_v37 = vpop.eup %1007  ;;  %v631_v9 = vadd.f32 %v630_v46, %v1293_v42 }
 0x18a   :  { %v829_v31 = vrot.slane %v828_v63, 2  ;;  %v732_v20 = vmul.f32 0.6931472, %v1008_v37 }
 0x18b   :  { %v642_v12 = vsub.f32 %v641_v6, %v631_v9 }
 0x18c   :  { %v830_v4 = vadd.f32 %v829_v31, %v828_v63  ;;  %v733_v18 = vadd.f32 %v732_v20, %v1307_v36 }
 0x18d   :  { %v743_v22 = vadd.f32 %v742_v21, %v642_v12 }
 0x18e   :  { %v831_v33 = vrot.slane %v830_v4, 1 }
 0x18f   :  { %v744_v8 = vsub.f32 %v743_v22, %v733_v18 }
 0x190   :  { %v832_v11 = vadd.f32 %v831_v33, %v830_v4 }
 0x191   :  { %v845_v24 = vadd.f32 %v844_v14, %v744_v8 }
 0x192   :  { %1009 = vlog2.f32 %v832_v11 }
 0x198   :  { %v1010_v17 = vpop.eup %1009 }
 0x199   :  { %v834_v23 = vmul.f32 0.6931472, %v1010_v17 }
 0x19b   :  { %v835_v42 = vadd.f32 %v834_v23, %v1324_v28 }
 0x19d   :  { %v846_v26 = vsub.f32 %v845_v24, %v835_v42 }
 0x19f   :  { %847 = vst [vmem:[#allocation2] sm:$0x1] %v846_v26 }
 0x1a0   :  { %858 = dma.vmem_to_hbm [thread:$0]  %s854_s14, 16, %s856_s17, [#allocation3]  }
 0x1a1   :  { %1036 = dma.done.wait [#allocation3], 16  }
 0x1a2   :  { %1037 = vsyncadd [#allocation3], 4294967280 }
 0x1a3   :  { %863 = vsyncpa [#allocation3], 1 }

</bundles_post_ra>
